<compile_context>
chip_gen: v6e
topology: v6e:2x2x1
jax: 0.10.0
libtpu: 0.0.40
codegen_flags: <defaults>
</compile_context>

<pallas_src>
import functools

import jax
import jax.numpy as jnp
from jax import lax
from jax.experimental import pallas as pl
from jax.experimental.pallas import tpu as pltpu


def _round_up(v, m):
    return ((v + m - 1) // m) * m


def dlcm_kernel(x_ref, lbl_ref,
                wih_ref, whh_ref, bih_ref, bhh_ref,
                w1_ref, b1_ref, w2_ref, b2_ref,
                scores_ref, loss_ref,
                seq_ref,
                *, L, HP, B, TB):
    """One batch tile (time-major, lane-dense-in-batch layout).

    x_ref   : (L, TB, D)  bf16/f32 — time-major, per-step gi slice is contiguous
    lbl_ref : (L, TB)     f32
    wih_ref : (D, 3*HP)   fused [r|z|n] input weights  (MXU dtype)
    whh_ref : (HP, 3*HP)  fused [r|z|n] hidden weights (MXU dtype)
    bih/bhh : (1, 3*HP)   f32
    w1_ref  : (HP, HP) MXU dtype; b1_ref: (1, HP) f32; w2_ref: (1, HP) f32
    b2_ref  : (1, 1)  SMEM f32
    scores_ref : (L, TB)  f32 — lane-dense in batch (unmasked stores at TB>=128)
    loss_ref   : (1, 1)   SMEM — per-tile masked BCE-with-logits partial sum
    seq_ref    : (L, TB, HP) f32 VMEM scratch — per-step hidden states
    """
    D = x_ref.shape[-1]
    mxu_dtype = wih_ref.dtype

    # ---- Hoisted input projection: one big MXU matmul (bf16 in, f32 acc).
    x_all = x_ref[...].reshape(L * TB, D)
    gi_all = (jnp.dot(x_all, wih_ref[...], preferred_element_type=jnp.float32)
              + bih_ref[...]).reshape(L, TB, 3 * HP)

    whh = whh_ref[...]                               # hoisted loads
    bhh = bhh_ref[...]

    # ---- GRU recurrence. Only h @ W_hh is sequential; gate slices are
    # 128-aligned (HP % 128 == 0).  Each step's h goes to VMEM scratch so the
    # L hidden states are never all live in vregs (no spill traffic).
    # TODO(synk): for L > ~16 switch this static unroll to
    #   lax.fori_loop(..., unroll=2..4) over seq_ref to cap code size.
    h = jnp.zeros((TB, HP), jnp.float32)
    for t in range(L):
        gi = gi_all[t]                               # (TB, 3HP) f32
        gh = jnp.dot(h.astype(mxu_dtype), whh,
                     preferred_element_type=jnp.float32) + bhh
        r = jax.nn.sigmoid(gi[:, 0:HP] + gh[:, 0:HP])
        z = jax.nn.sigmoid(gi[:, HP:2 * HP] + gh[:, HP:2 * HP])
        n = jnp.tanh(gi[:, 2 * HP:3 * HP] + r * gh[:, 2 * HP:3 * HP])
        h = z * (h - n) + n                          # == (1-z)*n + z*h
        seq_ref[t] = h

    # ---- Phi: gate from final state; fold w2 into gate, reduce over hidden
    # one (TB, HP) slab at a time (bounded live set).
    gate = jnp.tanh(jnp.dot(h.astype(mxu_dtype), w1_ref[...],
                            preferred_element_type=jnp.float32) + b1_ref[...])
    gate_w2 = gate * w2_ref[...]                     # (TB, HP) f32
    b2 = b2_ref[0, 0]

    s_rows = []
    for t in range(L):
        s_t = jnp.sum(seq_ref[t] * gate_w2, axis=-1) + b2   # (TB,)
        s_rows.append(s_t[None, :])
    s = jnp.concatenate(s_rows, axis=0)              # (L, TB) lane-dense
    scores_ref[...] = s

    # ---- Stable BCE-with-logits partial sum (mask padded batch columns).
    y = lbl_ref[...]
    bce = jnp.maximum(s, 0.0) - s * y + jnp.log(1.0 + jnp.exp(-jnp.abs(s)))
    col = lax.broadcasted_iota(jnp.int32, (1, TB), 1) + pl.program_id(0) * TB
    valid = (col < B).astype(jnp.float32)            # (1, TB) broadcasts over L
    loss_ref[0, 0] = jnp.sum(bce * valid)


@functools.partial(jax.jit, static_argnames=("use_bf16_matmul", "block_b"))
def dlcm_forward(x, labels, params, use_bf16_matmul=True, block_b=None):
    """x: (B, L, D) f32, labels: (B, L) f32. Returns dict like DLCM.forward."""
    B, L, D = x.shape
    H = params["w_hh"].shape[1]

    f32 = jnp.float32
    mxu_dtype = jnp.bfloat16 if use_bf16_matmul else f32

    HP = _round_up(H, 128)                     # lane-aligned hidden size
    if block_b is None:
        # v6e prefers 256 (2x256 MXU); v5e and v7x (64 MiB VMEM, 2 TCs -> keep
        # nt >= 2) prefer 128.  Sweep via block_b.
        TB = min(_round_up(B, 8), 128)
    else:
        TB = block_b
    BP = _round_up(B, TB)                      # padded batch
    nt = BP // TB                              # grid size (parallel over tiles)

    # ---- time-major, lane-dense-in-batch input/label layout. Layout plumbing
    # done once here instead of per-tile XLU transposes inside the kernel; the
    # pad copy is skipped entirely when B is already tile-aligned.
    x_t = jnp.transpose(x.astype(mxu_dtype), (1, 0, 2))      # (L, B, D)
    lbl_t = jnp.transpose(labels.astype(f32))                # (L, B)
    if BP == B:
        x_p, lbl_p = x_t, lbl_t
    else:
        x_p = jnp.zeros((L, BP, D), mxu_dtype).at[:, :B, :].set(x_t)
        lbl_p = jnp.zeros((L, BP), f32).at[:, :B].set(lbl_t)

    # --- weight prep: transpose + pad each gate block to HP (zero padding is
    #     exact for the GRU/phi math since h0 = 0 and padded rows/cols are 0).
    def pad_gates(w, in_dim, out_dtype):       # w: (3H, in) -> (in_pad, 3*HP)
        w = w.astype(f32)
        in_pad = HP if in_dim == H else in_dim
        blocks = []
        for g in range(3):
            wg_t = jnp.zeros((in_pad, HP), f32)
            wg_t = wg_t.at[:in_dim, :H].set(w[g * H:(g + 1) * H, :].T)
            blocks.append(wg_t)
        return jnp.concatenate(blocks, axis=1).astype(out_dtype)

    def pad_bias(b):                           # (3H,) -> (1, 3*HP)
        b = b.astype(f32)
        blocks = [jnp.zeros((HP,), f32).at[:H].set(b[g * H:(g + 1) * H])
                  for g in range(3)]
        return jnp.concatenate(blocks).reshape(1, 3 * HP)

    wih = pad_gates(params["w_ih"], D, mxu_dtype)            # (D, 3HP)
    whh = pad_gates(params["w_hh"], H, mxu_dtype)            # (HP, 3HP)
    bih = pad_bias(params["b_ih"])                           # (1, 3HP) f32
    bhh = pad_bias(params["b_hh"])                           # (1, 3HP) f32
    w1 = (jnp.zeros((HP, HP), f32).at[:H, :H]
          .set(params["w1"].T.astype(f32)).astype(mxu_dtype))
    b1 = jnp.zeros((1, HP), f32).at[0, :H].set(params["b1"].astype(f32))
    w2 = jnp.zeros((1, HP), f32).at[0, :H].set(
        params["w2"].reshape(-1).astype(f32))
    b2 = params["b2"].reshape(1, 1).astype(f32)

    # --- explicit VMEM budget (v5e scoped default is only ~16 MiB).
    wbytes = jnp.dtype(mxu_dtype).itemsize
    need = (2 * (L * TB * D * wbytes + L * TB * 4)               # x + labels (x2 buf)
            + 2 * (D * 3 * HP + HP * 3 * HP + HP * HP) * wbytes  # weights (x2 buf)
            + 2 * (2 * 3 * HP + 2 * HP) * 4                      # biases / w2
            + L * TB * 3 * HP * 4                                # gi_all temp
            + L * TB * HP * 4                                    # seq scratch
            + 2 * L * TB * 4)                                    # scores out
    vmem_limit = int(min(max(2 * need + (4 << 20), 32 << 20), 100 << 20))

    kernel = functools.partial(dlcm_kernel, L=L, HP=HP, B=B, TB=TB)
    vmem = pltpu.MemorySpace.VMEM
    smem = pltpu.MemorySpace.SMEM

    scores_p, loss_part = pl.pallas_call(
        kernel,
        grid=(nt,),
        out_shape=(
            jax.ShapeDtypeStruct((L, BP), f32),    # raw scores, time-major
            jax.ShapeDtypeStruct((nt, 1), f32),    # per-tile BCE partial sums
        ),
        in_specs=[
            pl.BlockSpec((L, TB, D), lambda i: (0, i, 0), memory_space=vmem),
            pl.BlockSpec((L, TB), lambda i: (0, i), memory_space=vmem),
            pl.BlockSpec((D, 3 * HP), lambda i: (0, 0), memory_space=vmem),
            pl.BlockSpec((HP, 3 * HP), lambda i: (0, 0), memory_space=vmem),
            pl.BlockSpec((1, 3 * HP), lambda i: (0, 0), memory_space=vmem),
            pl.BlockSpec((1, 3 * HP), lambda i: (0, 0), memory_space=vmem),
            pl.BlockSpec((HP, HP), lambda i: (0, 0), memory_space=vmem),
            pl.BlockSpec((1, HP), lambda i: (0, 0), memory_space=vmem),
            pl.BlockSpec((1, HP), lambda i: (0, 0), memory_space=vmem),
            pl.BlockSpec((1, 1), lambda i: (0, 0), memory_space=smem),
        ],
        out_specs=(
            pl.BlockSpec((L, TB), lambda i: (0, i), memory_space=vmem),
            pl.BlockSpec((1, 1), lambda i: (i, 0), memory_space=smem),
        ),
        scratch_shapes=[pltpu.VMEM((L, TB, HP), f32)],
        compiler_params=pltpu.CompilerParams(
            dimension_semantics=("parallel",),
            vmem_limit_bytes=vmem_limit),
    )(x_p, lbl_p, wih, whh, bih, bhh, w1, b1, w2, b2)

    scores = jnp.transpose(scores_p[:, :B])          # (B, L) — tiny, wrapper-side
    probs = jax.nn.sigmoid(scores)
    loss = jnp.sum(loss_part) / (B * L)
    return {
        "logits": probs,     # PyTorch module stores sigmoid(scores) under 'logits'
        "scores": scores,    # raw phi scores
        "labels": labels,
        "loss": loss,
    }


def ref_forward(x, labels, p):
    """Pure-JAX reference matching PyTorch GRU + DLCM phi semantics."""
    B, L, D = x.shape
    H = p["w_hh"].shape[1]
    h = jnp.zeros((B, H), jnp.float32)
    seq = []
    for t in range(L):
        xt = x[:, t, :]
        gi = xt @ p["w_ih"].T + p["b_ih"]
        gh = h @ p["w_hh"].T + p["b_hh"]
        r = jax.nn.sigmoid(gi[:, :H] + gh[:, :H])
        z = jax.nn.sigmoid(gi[:, H:2 * H] + gh[:, H:2 * H])
        n = jnp.tanh(gi[:, 2 * H:] + r * gh[:, 2 * H:])
        h = (1.0 - z) * n + z * h
        seq.append(h)
    seq = jnp.stack(seq, axis=1)                                  # (B, L, H)
    gate = jnp.tanh(h @ p["w1"].T + p["b1"])                      # (B, H)
    s = jnp.einsum("blh,h->bl", seq * gate[:, None, :], p["w2"][0]) + p["b2"][0]
    probs = jax.nn.sigmoid(s)
    eps = 1e-12
    bce = -(labels * jnp.log(jnp.clip(probs, eps, 1.0))
            + (1.0 - labels) * jnp.log(jnp.clip(1.0 - probs, eps, 1.0)))
    return s, probs, jnp.mean(bce)


if __name__ == "__main__":
    # small shapes consistent with the module:
    #   B = batch, L = max_list_len, D = module_inp_dim (itm_emb_dim), H = hidden_size
    B, L, D, H = 2, 8, 32, 32

    key = jax.random.PRNGKey(0)
    ks = jax.random.split(key, 10)
    scale = 0.1
    params = {
        "w_ih": scale * jax.random.normal(ks[0], (3 * H, D), jnp.float32),
        "w_hh": scale * jax.random.normal(ks[1], (3 * H, H), jnp.float32),
        "b_ih": scale * jax.random.normal(ks[2], (3 * H,), jnp.float32),
        "b_hh": scale * jax.random.normal(ks[3], (3 * H,), jnp.float32),
        "w1":   scale * jax.random.normal(ks[4], (H, H), jnp.float32),
        "b1":   scale * jax.random.normal(ks[5], (H,), jnp.float32),
        "w2":   scale * jax.random.normal(ks[6], (1, H), jnp.float32),
        "b2":   scale * jax.random.normal(ks[7], (1,), jnp.float32),
    }
    x = jax.random.normal(ks[8], (B, L, D), jnp.float32)
    labels = jax.random.bernoulli(ks[9], 0.5, (B, L)).astype(jnp.float32)

    s_ref, p_ref, loss_ref_v = ref_forward(x, labels, params)

    # Exact-f32 path: tight parity with the PyTorch forward.
    out_f32 = dlcm_forward(x, labels, params, use_bf16_matmul=False)
    jax.block_until_ready(out_f32)
    assert jnp.allclose(out_f32["scores"], s_ref, atol=1e-4, rtol=1e-4)
    assert jnp.allclose(out_f32["logits"], p_ref, atol=1e-4, rtol=1e-4)
    assert jnp.allclose(out_f32["loss"], loss_ref_v, atol=1e-4, rtol=1e-4)

    # Default bf16-MXU fast path: looser tolerance (bf16 inputs, f32 accumulate).
    out = dlcm_forward(x, labels, params)
    jax.block_until_ready(out)
    assert jnp.allclose(out["scores"], s_ref, atol=3e-2, rtol=3e-2)
    assert jnp.allclose(out["logits"], p_ref, atol=3e-2, rtol=3e-2)
    assert jnp.allclose(out["loss"], loss_ref_v, atol=3e-2, rtol=3e-2)

    print("KERNEL_OK")
</pallas_src>

<mosaic_0001>
module attributes {stable_mosaic.version = 11 : i64} {
  func.func @dlcm_kernel(%arg0: i32, %arg1: memref<8x8x32xf32, #tpu.memory_space<vmem>>, %arg2: memref<8x8xf32, #tpu.memory_space<vmem>>, %arg3: memref<32x384xf32, #tpu.memory_space<vmem>>, %arg4: memref<128x384xf32, #tpu.memory_space<vmem>>, %arg5: memref<1x384xf32, #tpu.memory_space<vmem>>, %arg6: memref<1x384xf32, #tpu.memory_space<vmem>>, %arg7: memref<128x128xf32, #tpu.memory_space<vmem>>, %arg8: memref<1x128xf32, #tpu.memory_space<vmem>>, %arg9: memref<1x128xf32, #tpu.memory_space<vmem>>, %arg10: memref<1x1xf32, #tpu.memory_space<smem>>, %arg11: memref<8x8xf32, #tpu.memory_space<vmem>>, %arg12: memref<1x1xf32, #tpu.memory_space<smem>>, %arg13: memref<8x8x128xf32, #tpu.memory_space<vmem>>) attributes {dimension_semantics = [#tpu.dimension_semantics<parallel>], iteration_bounds = array<i64: 1>, scalar_prefetch = 0 : i64, scratch_operands = 1 : i64, tpu.core_type = #tpu.core_type<tc>, window_params = [{transform_indices = @transform_0, window_bounds = array<i64: 8, 8, 32>}, {transform_indices = @transform_1, window_bounds = array<i64: 8, 8>}, {transform_indices = @transform_2, window_bounds = array<i64: 32, 384>}, {pipeline_mode = #tpu.pipeline_mode<synchronous>, transform_indices = @transform_3, window_bounds = array<i64: 128, 384>}, {pipeline_mode = #tpu.pipeline_mode<synchronous>, transform_indices = @transform_4, window_bounds = array<i64: 1, 384>}, {pipeline_mode = #tpu.pipeline_mode<synchronous>, transform_indices = @transform_5, window_bounds = array<i64: 1, 384>}, {pipeline_mode = #tpu.pipeline_mode<synchronous>, transform_indices = @transform_6, window_bounds = array<i64: 128, 128>}, {pipeline_mode = #tpu.pipeline_mode<synchronous>, transform_indices = @transform_7, window_bounds = array<i64: 1, 128>}, {pipeline_mode = #tpu.pipeline_mode<synchronous>, transform_indices = @transform_8, window_bounds = array<i64: 1, 128>}, {transform_indices = @transform_9, window_bounds = array<i64: 1, 1>}, {transform_indices = @transform_10, window_bounds = array<i64: 8, 8>}, {transform_indices = @transform_11, window_bounds = array<i64: 1, 1>}]} {
    %c0 = arith.constant 0 : index
    %c0_0 = arith.constant 0 : index
    %c0_1 = arith.constant 0 : index
    %0 = vector.load %arg1[%c0, %c0_0, %c0_1] : memref<8x8x32xf32, #tpu.memory_space<vmem>>, vector<8x8x32xf32>
    %1 = vector.shape_cast %0 : vector<8x8x32xf32> to vector<64x32xf32>
    %c0_2 = arith.constant 0 : index
    %c0_3 = arith.constant 0 : index
    %2 = vector.load %arg3[%c0_2, %c0_3] : memref<32x384xf32, #tpu.memory_space<vmem>>, vector<32x384xf32>
    %cst = arith.constant dense<0.000000e+00> : vector<64x384xf32>
    %3 = tpu.matmul %1, %2, %cst {dimension_numbers = #tpu.dot_dimension_numbers<[1], [0], [0], [1], [0, 0, 1, 1], [], []>} : vector<64x32xf32>, vector<32x384xf32>, vector<64x384xf32> -> vector<64x384xf32>
    %c0_4 = arith.constant 0 : index
    %c0_5 = arith.constant 0 : index
    %4 = vector.load %arg5[%c0_4, %c0_5] : memref<1x384xf32, #tpu.memory_space<vmem>>, vector<1x384xf32>
    %5 = vector.broadcast %4 : vector<1x384xf32> to vector<64x384xf32>
    %6 = arith.addf %3, %5 : vector<64x384xf32>
    %7 = vector.shape_cast %6 : vector<64x384xf32> to vector<8x8x384xf32>
    %c0_6 = arith.constant 0 : index
    %c0_7 = arith.constant 0 : index
    %8 = vector.load %arg4[%c0_6, %c0_7] : memref<128x384xf32, #tpu.memory_space<vmem>>, vector<128x384xf32>
    %c0_8 = arith.constant 0 : index
    %c0_9 = arith.constant 0 : index
    %9 = vector.load %arg6[%c0_8, %c0_9] : memref<1x384xf32, #tpu.memory_space<vmem>>, vector<1x384xf32>
    %cst_10 = arith.constant 0.000000e+00 : f32
    %10 = vector.broadcast %cst_10 : f32 to vector<8x128xf32>
    %11 = vector.extract_strided_slice %7 {offsets = [0, 0, 0], sizes = [1, 8, 384], strides = [1, 1, 1]} : vector<8x8x384xf32> to vector<1x8x384xf32>
    %12 = vector.shape_cast %11 : vector<1x8x384xf32> to vector<8x384xf32>
    %cst_11 = arith.constant dense<0.000000e+00> : vector<8x384xf32>
    %13 = tpu.matmul %10, %8, %cst_11 {dimension_numbers = #tpu.dot_dimension_numbers<[1], [0], [0], [1], [0, 0, 1, 1], [], []>} : vector<8x128xf32>, vector<128x384xf32>, vector<8x384xf32> -> vector<8x384xf32>
    %14 = vector.broadcast %9 : vector<1x384xf32> to vector<8x384xf32>
    %15 = arith.addf %13, %14 : vector<8x384xf32>
    %16 = vector.extract_strided_slice %12 {offsets = [0, 0], sizes = [8, 128], strides = [1, 1]} : vector<8x384xf32> to vector<8x128xf32>
    %17 = vector.extract_strided_slice %15 {offsets = [0, 0], sizes = [8, 128], strides = [1, 1]} : vector<8x384xf32> to vector<8x128xf32>
    %18 = arith.addf %16, %17 : vector<8x128xf32>
    %19 = arith.negf %18 : vector<8x128xf32>
    %20 = math.exp %19 : vector<8x128xf32>
    %cst_12 = arith.constant 1.000000e+00 : f32
    %21 = vector.broadcast %cst_12 : f32 to vector<8x128xf32>
    %22 = arith.addf %21, %20 : vector<8x128xf32>
    %23 = arith.divf %21, %22 : vector<8x128xf32>
    %24 = vector.extract_strided_slice %12 {offsets = [0, 128], sizes = [8, 128], strides = [1, 1]} : vector<8x384xf32> to vector<8x128xf32>
    %25 = vector.extract_strided_slice %15 {offsets = [0, 128], sizes = [8, 128], strides = [1, 1]} : vector<8x384xf32> to vector<8x128xf32>
    %26 = arith.addf %24, %25 : vector<8x128xf32>
    %27 = arith.negf %26 : vector<8x128xf32>
    %28 = math.exp %27 : vector<8x128xf32>
    %cst_13 = arith.constant 1.000000e+00 : f32
    %29 = vector.broadcast %cst_13 : f32 to vector<8x128xf32>
    %30 = arith.addf %29, %28 : vector<8x128xf32>
    %31 = arith.divf %29, %30 : vector<8x128xf32>
    %32 = vector.extract_strided_slice %12 {offsets = [0, 256], sizes = [8, 128], strides = [1, 1]} : vector<8x384xf32> to vector<8x128xf32>
    %33 = vector.extract_strided_slice %15 {offsets = [0, 256], sizes = [8, 128], strides = [1, 1]} : vector<8x384xf32> to vector<8x128xf32>
    %34 = arith.mulf %23, %33 : vector<8x128xf32>
    %35 = arith.addf %32, %34 : vector<8x128xf32>
    %36 = math.tanh %35 : vector<8x128xf32>
    %37 = arith.subf %10, %36 : vector<8x128xf32>
    %38 = arith.mulf %31, %37 : vector<8x128xf32>
    %39 = arith.addf %38, %36 : vector<8x128xf32>
    %c0_14 = arith.constant 0 : index
    %c0_15 = arith.constant 0 : index
    %c0_16 = arith.constant 0 : index
    %40 = vector.load %arg13[%c0_14, %c0_15, %c0_16] : memref<8x8x128xf32, #tpu.memory_space<vmem>>, vector<1x8x128xf32>
    %41 = vector.shape_cast %40 : vector<1x8x128xf32> to vector<8x128xf32>
    %42 = vector.shape_cast %39 : vector<8x128xf32> to vector<1x8x128xf32>
    tpu.vector_store %arg13[%c0_14, %c0_15, %c0_16], %42 {strides = array<i32>} : memref<8x8x128xf32, #tpu.memory_space<vmem>>, vector<1x8x128xf32>,
    %43 = vector.extract_strided_slice %7 {offsets = [1, 0, 0], sizes = [1, 8, 384], strides = [1, 1, 1]} : vector<8x8x384xf32> to vector<1x8x384xf32>
    %44 = vector.shape_cast %43 : vector<1x8x384xf32> to vector<8x384xf32>
    %cst_17 = arith.constant dense<0.000000e+00> : vector<8x384xf32>
    %45 = tpu.matmul %39, %8, %cst_17 {dimension_numbers = #tpu.dot_dimension_numbers<[1], [0], [0], [1], [0, 0, 1, 1], [], []>} : vector<8x128xf32>, vector<128x384xf32>, vector<8x384xf32> -> vector<8x384xf32>
    %46 = vector.broadcast %9 : vector<1x384xf32> to vector<8x384xf32>
    %47 = arith.addf %45, %46 : vector<8x384xf32>
    %48 = vector.extract_strided_slice %44 {offsets = [0, 0], sizes = [8, 128], strides = [1, 1]} : vector<8x384xf32> to vector<8x128xf32>
    %49 = vector.extract_strided_slice %47 {offsets = [0, 0], sizes = [8, 128], strides = [1, 1]} : vector<8x384xf32> to vector<8x128xf32>
    %50 = arith.addf %48, %49 : vector<8x128xf32>
    %51 = arith.negf %50 : vector<8x128xf32>
    %52 = math.exp %51 : vector<8x128xf32>
    %cst_18 = arith.constant 1.000000e+00 : f32
    %53 = vector.broadcast %cst_18 : f32 to vector<8x128xf32>
    %54 = arith.addf %53, %52 : vector<8x128xf32>
    %55 = arith.divf %53, %54 : vector<8x128xf32>
    %56 = vector.extract_strided_slice %44 {offsets = [0, 128], sizes = [8, 128], strides = [1, 1]} : vector<8x384xf32> to vector<8x128xf32>
    %57 = vector.extract_strided_slice %47 {offsets = [0, 128], sizes = [8, 128], strides = [1, 1]} : vector<8x384xf32> to vector<8x128xf32>
    %58 = arith.addf %56, %57 : vector<8x128xf32>
    %59 = arith.negf %58 : vector<8x128xf32>
    %60 = math.exp %59 : vector<8x128xf32>
    %cst_19 = arith.constant 1.000000e+00 : f32
    %61 = vector.broadcast %cst_19 : f32 to vector<8x128xf32>
    %62 = arith.addf %61, %60 : vector<8x128xf32>
    %63 = arith.divf %61, %62 : vector<8x128xf32>
    %64 = vector.extract_strided_slice %44 {offsets = [0, 256], sizes = [8, 128], strides = [1, 1]} : vector<8x384xf32> to vector<8x128xf32>
    %65 = vector.extract_strided_slice %47 {offsets = [0, 256], sizes = [8, 128], strides = [1, 1]} : vector<8x384xf32> to vector<8x128xf32>
    %66 = arith.mulf %55, %65 : vector<8x128xf32>
    %67 = arith.addf %64, %66 : vector<8x128xf32>
    %68 = math.tanh %67 : vector<8x128xf32>
    %69 = arith.subf %39, %68 : vector<8x128xf32>
    %70 = arith.mulf %63, %69 : vector<8x128xf32>
    %71 = arith.addf %70, %68 : vector<8x128xf32>
    %c1 = arith.constant 1 : index
    %c0_20 = arith.constant 0 : index
    %c0_21 = arith.constant 0 : index
    %72 = vector.load %arg13[%c1, %c0_20, %c0_21] : memref<8x8x128xf32, #tpu.memory_space<vmem>>, vector<1x8x128xf32>
    %73 = vector.shape_cast %72 : vector<1x8x128xf32> to vector<8x128xf32>
    %74 = vector.shape_cast %71 : vector<8x128xf32> to vector<1x8x128xf32>
    tpu.vector_store %arg13[%c1, %c0_20, %c0_21], %74 {strides = array<i32>} : memref<8x8x128xf32, #tpu.memory_space<vmem>>, vector<1x8x128xf32>,
    %75 = vector.extract_strided_slice %7 {offsets = [2, 0, 0], sizes = [1, 8, 384], strides = [1, 1, 1]} : vector<8x8x384xf32> to vector<1x8x384xf32>
    %76 = vector.shape_cast %75 : vector<1x8x384xf32> to vector<8x384xf32>
    %cst_22 = arith.constant dense<0.000000e+00> : vector<8x384xf32>
    %77 = tpu.matmul %71, %8, %cst_22 {dimension_numbers = #tpu.dot_dimension_numbers<[1], [0], [0], [1], [0, 0, 1, 1], [], []>} : vector<8x128xf32>, vector<128x384xf32>, vector<8x384xf32> -> vector<8x384xf32>
    %78 = vector.broadcast %9 : vector<1x384xf32> to vector<8x384xf32>
    %79 = arith.addf %77, %78 : vector<8x384xf32>
    %80 = vector.extract_strided_slice %76 {offsets = [0, 0], sizes = [8, 128], strides = [1, 1]} : vector<8x384xf32> to vector<8x128xf32>
    %81 = vector.extract_strided_slice %79 {offsets = [0, 0], sizes = [8, 128], strides = [1, 1]} : vector<8x384xf32> to vector<8x128xf32>
    %82 = arith.addf %80, %81 : vector<8x128xf32>
    %83 = arith.negf %82 : vector<8x128xf32>
    %84 = math.exp %83 : vector<8x128xf32>
    %cst_23 = arith.constant 1.000000e+00 : f32
    %85 = vector.broadcast %cst_23 : f32 to vector<8x128xf32>
    %86 = arith.addf %85, %84 : vector<8x128xf32>
    %87 = arith.divf %85, %86 : vector<8x128xf32>
    %88 = vector.extract_strided_slice %76 {offsets = [0, 128], sizes = [8, 128], strides = [1, 1]} : vector<8x384xf32> to vector<8x128xf32>
    %89 = vector.extract_strided_slice %79 {offsets = [0, 128], sizes = [8, 128], strides = [1, 1]} : vector<8x384xf32> to vector<8x128xf32>
    %90 = arith.addf %88, %89 : vector<8x128xf32>
    %91 = arith.negf %90 : vector<8x128xf32>
    %92 = math.exp %91 : vector<8x128xf32>
    %cst_24 = arith.constant 1.000000e+00 : f32
    %93 = vector.broadcast %cst_24 : f32 to vector<8x128xf32>
    %94 = arith.addf %93, %92 : vector<8x128xf32>
    %95 = arith.divf %93, %94 : vector<8x128xf32>
    %96 = vector.extract_strided_slice %76 {offsets = [0, 256], sizes = [8, 128], strides = [1, 1]} : vector<8x384xf32> to vector<8x128xf32>
    %97 = vector.extract_strided_slice %79 {offsets = [0, 256], sizes = [8, 128], strides = [1, 1]} : vector<8x384xf32> to vector<8x128xf32>
    %98 = arith.mulf %87, %97 : vector<8x128xf32>
    %99 = arith.addf %96, %98 : vector<8x128xf32>
    %100 = math.tanh %99 : vector<8x128xf32>
    %101 = arith.subf %71, %100 : vector<8x128xf32>
    %102 = arith.mulf %95, %101 : vector<8x128xf32>
    %103 = arith.addf %102, %100 : vector<8x128xf32>
    %c2 = arith.constant 2 : index
    %c0_25 = arith.constant 0 : index
    %c0_26 = arith.constant 0 : index
    %104 = vector.load %arg13[%c2, %c0_25, %c0_26] : memref<8x8x128xf32, #tpu.memory_space<vmem>>, vector<1x8x128xf32>
    %105 = vector.shape_cast %104 : vector<1x8x128xf32> to vector<8x128xf32>
    %106 = vector.shape_cast %103 : vector<8x128xf32> to vector<1x8x128xf32>
    tpu.vector_store %arg13[%c2, %c0_25, %c0_26], %106 {strides = array<i32>} : memref<8x8x128xf32, #tpu.memory_space<vmem>>, vector<1x8x128xf32>,
    %107 = vector.extract_strided_slice %7 {offsets = [3, 0, 0], sizes = [1, 8, 384], strides = [1, 1, 1]} : vector<8x8x384xf32> to vector<1x8x384xf32>
    %108 = vector.shape_cast %107 : vector<1x8x384xf32> to vector<8x384xf32>
    %cst_27 = arith.constant dense<0.000000e+00> : vector<8x384xf32>
    %109 = tpu.matmul %103, %8, %cst_27 {dimension_numbers = #tpu.dot_dimension_numbers<[1], [0], [0], [1], [0, 0, 1, 1], [], []>} : vector<8x128xf32>, vector<128x384xf32>, vector<8x384xf32> -> vector<8x384xf32>
    %110 = vector.broadcast %9 : vector<1x384xf32> to vector<8x384xf32>
    %111 = arith.addf %109, %110 : vector<8x384xf32>
    %112 = vector.extract_strided_slice %108 {offsets = [0, 0], sizes = [8, 128], strides = [1, 1]} : vector<8x384xf32> to vector<8x128xf32>
    %113 = vector.extract_strided_slice %111 {offsets = [0, 0], sizes = [8, 128], strides = [1, 1]} : vector<8x384xf32> to vector<8x128xf32>
    %114 = arith.addf %112, %113 : vector<8x128xf32>
    %115 = arith.negf %114 : vector<8x128xf32>
    %116 = math.exp %115 : vector<8x128xf32>
    %cst_28 = arith.constant 1.000000e+00 : f32
    %117 = vector.broadcast %cst_28 : f32 to vector<8x128xf32>
    %118 = arith.addf %117, %116 : vector<8x128xf32>
    %119 = arith.divf %117, %118 : vector<8x128xf32>
    %120 = vector.extract_strided_slice %108 {offsets = [0, 128], sizes = [8, 128], strides = [1, 1]} : vector<8x384xf32> to vector<8x128xf32>
    %121 = vector.extract_strided_slice %111 {offsets = [0, 128], sizes = [8, 128], strides = [1, 1]} : vector<8x384xf32> to vector<8x128xf32>
    %122 = arith.addf %120, %121 : vector<8x128xf32>
    %123 = arith.negf %122 : vector<8x128xf32>
    %124 = math.exp %123 : vector<8x128xf32>
    %cst_29 = arith.constant 1.000000e+00 : f32
    %125 = vector.broadcast %cst_29 : f32 to vector<8x128xf32>
    %126 = arith.addf %125, %124 : vector<8x128xf32>
    %127 = arith.divf %125, %126 : vector<8x128xf32>
    %128 = vector.extract_strided_slice %108 {offsets = [0, 256], sizes = [8, 128], strides = [1, 1]} : vector<8x384xf32> to vector<8x128xf32>
    %129 = vector.extract_strided_slice %111 {offsets = [0, 256], sizes = [8, 128], strides = [1, 1]} : vector<8x384xf32> to vector<8x128xf32>
    %130 = arith.mulf %119, %129 : vector<8x128xf32>
    %131 = arith.addf %128, %130 : vector<8x128xf32>
    %132 = math.tanh %131 : vector<8x128xf32>
    %133 = arith.subf %103, %132 : vector<8x128xf32>
    %134 = arith.mulf %127, %133 : vector<8x128xf32>
    %135 = arith.addf %134, %132 : vector<8x128xf32>
    %c3 = arith.constant 3 : index
    %c0_30 = arith.constant 0 : index
    %c0_31 = arith.constant 0 : index
    %136 = vector.load %arg13[%c3, %c0_30, %c0_31] : memref<8x8x128xf32, #tpu.memory_space<vmem>>, vector<1x8x128xf32>
    %137 = vector.shape_cast %136 : vector<1x8x128xf32> to vector<8x128xf32>
    %138 = vector.shape_cast %135 : vector<8x128xf32> to vector<1x8x128xf32>
    tpu.vector_store %arg13[%c3, %c0_30, %c0_31], %138 {strides = array<i32>} : memref<8x8x128xf32, #tpu.memory_space<vmem>>, vector<1x8x128xf32>,
    %139 = vector.extract_strided_slice %7 {offsets = [4, 0, 0], sizes = [1, 8, 384], strides = [1, 1, 1]} : vector<8x8x384xf32> to vector<1x8x384xf32>
    %140 = vector.shape_cast %139 : vector<1x8x384xf32> to vector<8x384xf32>
    %cst_32 = arith.constant dense<0.000000e+00> : vector<8x384xf32>
    %141 = tpu.matmul %135, %8, %cst_32 {dimension_numbers = #tpu.dot_dimension_numbers<[1], [0], [0], [1], [0, 0, 1, 1], [], []>} : vector<8x128xf32>, vector<128x384xf32>, vector<8x384xf32> -> vector<8x384xf32>
    %142 = vector.broadcast %9 : vector<1x384xf32> to vector<8x384xf32>
    %143 = arith.addf %141, %142 : vector<8x384xf32>
    %144 = vector.extract_strided_slice %140 {offsets = [0, 0], sizes = [8, 128], strides = [1, 1]} : vector<8x384xf32> to vector<8x128xf32>
    %145 = vector.extract_strided_slice %143 {offsets = [0, 0], sizes = [8, 128], strides = [1, 1]} : vector<8x384xf32> to vector<8x128xf32>
    %146 = arith.addf %144, %145 : vector<8x128xf32>
    %147 = arith.negf %146 : vector<8x128xf32>
    %148 = math.exp %147 : vector<8x128xf32>
    %cst_33 = arith.constant 1.000000e+00 : f32
    %149 = vector.broadcast %cst_33 : f32 to vector<8x128xf32>
    %150 = arith.addf %149, %148 : vector<8x128xf32>
    %151 = arith.divf %149, %150 : vector<8x128xf32>
    %152 = vector.extract_strided_slice %140 {offsets = [0, 128], sizes = [8, 128], strides = [1, 1]} : vector<8x384xf32> to vector<8x128xf32>
    %153 = vector.extract_strided_slice %143 {offsets = [0, 128], sizes = [8, 128], strides = [1, 1]} : vector<8x384xf32> to vector<8x128xf32>
    %154 = arith.addf %152, %153 : vector<8x128xf32>
    %155 = arith.negf %154 : vector<8x128xf32>
    %156 = math.exp %155 : vector<8x128xf32>
    %cst_34 = arith.constant 1.000000e+00 : f32
    %157 = vector.broadcast %cst_34 : f32 to vector<8x128xf32>
    %158 = arith.addf %157, %156 : vector<8x128xf32>
    %159 = arith.divf %157, %158 : vector<8x128xf32>
    %160 = vector.extract_strided_slice %140 {offsets = [0, 256], sizes = [8, 128], strides = [1, 1]} : vector<8x384xf32> to vector<8x128xf32>
    %161 = vector.extract_strided_slice %143 {offsets = [0, 256], sizes = [8, 128], strides = [1, 1]} : vector<8x384xf32> to vector<8x128xf32>
    %162 = arith.mulf %151, %161 : vector<8x128xf32>
    %163 = arith.addf %160, %162 : vector<8x128xf32>
    %164 = math.tanh %163 : vector<8x128xf32>
    %165 = arith.subf %135, %164 : vector<8x128xf32>
    %166 = arith.mulf %159, %165 : vector<8x128xf32>
    %167 = arith.addf %166, %164 : vector<8x128xf32>
    %c4 = arith.constant 4 : index
    %c0_35 = arith.constant 0 : index
    %c0_36 = arith.constant 0 : index
    %168 = vector.load %arg13[%c4, %c0_35, %c0_36] : memref<8x8x128xf32, #tpu.memory_space<vmem>>, vector<1x8x128xf32>
    %169 = vector.shape_cast %168 : vector<1x8x128xf32> to vector<8x128xf32>
    %170 = vector.shape_cast %167 : vector<8x128xf32> to vector<1x8x128xf32>
    tpu.vector_store %arg13[%c4, %c0_35, %c0_36], %170 {strides = array<i32>} : memref<8x8x128xf32, #tpu.memory_space<vmem>>, vector<1x8x128xf32>,
    %171 = vector.extract_strided_slice %7 {offsets = [5, 0, 0], sizes = [1, 8, 384], strides = [1, 1, 1]} : vector<8x8x384xf32> to vector<1x8x384xf32>
    %172 = vector.shape_cast %171 : vector<1x8x384xf32> to vector<8x384xf32>
    %cst_37 = arith.constant dense<0.000000e+00> : vector<8x384xf32>
    %173 = tpu.matmul %167, %8, %cst_37 {dimension_numbers = #tpu.dot_dimension_numbers<[1], [0], [0], [1], [0, 0, 1, 1], [], []>} : vector<8x128xf32>, vector<128x384xf32>, vector<8x384xf32> -> vector<8x384xf32>
    %174 = vector.broadcast %9 : vector<1x384xf32> to vector<8x384xf32>
    %175 = arith.addf %173, %174 : vector<8x384xf32>
    %176 = vector.extract_strided_slice %172 {offsets = [0, 0], sizes = [8, 128], strides = [1, 1]} : vector<8x384xf32> to vector<8x128xf32>
    %177 = vector.extract_strided_slice %175 {offsets = [0, 0], sizes = [8, 128], strides = [1, 1]} : vector<8x384xf32> to vector<8x128xf32>
    %178 = arith.addf %176, %177 : vector<8x128xf32>
    %179 = arith.negf %178 : vector<8x128xf32>
    %180 = math.exp %179 : vector<8x128xf32>
    %cst_38 = arith.constant 1.000000e+00 : f32
    %181 = vector.broadcast %cst_38 : f32 to vector<8x128xf32>
    %182 = arith.addf %181, %180 : vector<8x128xf32>
    %183 = arith.divf %181, %182 : vector<8x128xf32>
    %184 = vector.extract_strided_slice %172 {offsets = [0, 128], sizes = [8, 128], strides = [1, 1]} : vector<8x384xf32> to vector<8x128xf32>
    %185 = vector.extract_strided_slice %175 {offsets = [0, 128], sizes = [8, 128], strides = [1, 1]} : vector<8x384xf32> to vector<8x128xf32>
    %186 = arith.addf %184, %185 : vector<8x128xf32>
    %187 = arith.negf %186 : vector<8x128xf32>
    %188 = math.exp %187 : vector<8x128xf32>
    %cst_39 = arith.constant 1.000000e+00 : f32
    %189 = vector.broadcast %cst_39 : f32 to vector<8x128xf32>
    %190 = arith.addf %189, %188 : vector<8x128xf32>
    %191 = arith.divf %189, %190 : vector<8x128xf32>
    %192 = vector.extract_strided_slice %172 {offsets = [0, 256], sizes = [8, 128], strides = [1, 1]} : vector<8x384xf32> to vector<8x128xf32>
    %193 = vector.extract_strided_slice %175 {offsets = [0, 256], sizes = [8, 128], strides = [1, 1]} : vector<8x384xf32> to vector<8x128xf32>
    %194 = arith.mulf %183, %193 : vector<8x128xf32>
    %195 = arith.addf %192, %194 : vector<8x128xf32>
    %196 = math.tanh %195 : vector<8x128xf32>
    %197 = arith.subf %167, %196 : vector<8x128xf32>
    %198 = arith.mulf %191, %197 : vector<8x128xf32>
    %199 = arith.addf %198, %196 : vector<8x128xf32>
    %c5 = arith.constant 5 : index
    %c0_40 = arith.constant 0 : index
    %c0_41 = arith.constant 0 : index
    %200 = vector.load %arg13[%c5, %c0_40, %c0_41] : memref<8x8x128xf32, #tpu.memory_space<vmem>>, vector<1x8x128xf32>
    %201 = vector.shape_cast %200 : vector<1x8x128xf32> to vector<8x128xf32>
    %202 = vector.shape_cast %199 : vector<8x128xf32> to vector<1x8x128xf32>
    tpu.vector_store %arg13[%c5, %c0_40, %c0_41], %202 {strides = array<i32>} : memref<8x8x128xf32, #tpu.memory_space<vmem>>, vector<1x8x128xf32>,
    %203 = vector.extract_strided_slice %7 {offsets = [6, 0, 0], sizes = [1, 8, 384], strides = [1, 1, 1]} : vector<8x8x384xf32> to vector<1x8x384xf32>
    %204 = vector.shape_cast %203 : vector<1x8x384xf32> to vector<8x384xf32>
    %cst_42 = arith.constant dense<0.000000e+00> : vector<8x384xf32>
    %205 = tpu.matmul %199, %8, %cst_42 {dimension_numbers = #tpu.dot_dimension_numbers<[1], [0], [0], [1], [0, 0, 1, 1], [], []>} : vector<8x128xf32>, vector<128x384xf32>, vector<8x384xf32> -> vector<8x384xf32>
    %206 = vector.broadcast %9 : vector<1x384xf32> to vector<8x384xf32>
    %207 = arith.addf %205, %206 : vector<8x384xf32>
    %208 = vector.extract_strided_slice %204 {offsets = [0, 0], sizes = [8, 128], strides = [1, 1]} : vector<8x384xf32> to vector<8x128xf32>
    %209 = vector.extract_strided_slice %207 {offsets = [0, 0], sizes = [8, 128], strides = [1, 1]} : vector<8x384xf32> to vector<8x128xf32>
    %210 = arith.addf %208, %209 : vector<8x128xf32>
    %211 = arith.negf %210 : vector<8x128xf32>
    %212 = math.exp %211 : vector<8x128xf32>
    %cst_43 = arith.constant 1.000000e+00 : f32
    %213 = vector.broadcast %cst_43 : f32 to vector<8x128xf32>
    %214 = arith.addf %213, %212 : vector<8x128xf32>
    %215 = arith.divf %213, %214 : vector<8x128xf32>
    %216 = vector.extract_strided_slice %204 {offsets = [0, 128], sizes = [8, 128], strides = [1, 1]} : vector<8x384xf32> to vector<8x128xf32>
    %217 = vector.extract_strided_slice %207 {offsets = [0, 128], sizes = [8, 128], strides = [1, 1]} : vector<8x384xf32> to vector<8x128xf32>
    %218 = arith.addf %216, %217 : vector<8x128xf32>
    %219 = arith.negf %218 : vector<8x128xf32>
    %220 = math.exp %219 : vector<8x128xf32>
    %cst_44 = arith.constant 1.000000e+00 : f32
    %221 = vector.broadcast %cst_44 : f32 to vector<8x128xf32>
    %222 = arith.addf %221, %220 : vector<8x128xf32>
    %223 = arith.divf %221, %222 : vector<8x128xf32>
    %224 = vector.extract_strided_slice %204 {offsets = [0, 256], sizes = [8, 128], strides = [1, 1]} : vector<8x384xf32> to vector<8x128xf32>
    %225 = vector.extract_strided_slice %207 {offsets = [0, 256], sizes = [8, 128], strides = [1, 1]} : vector<8x384xf32> to vector<8x128xf32>
    %226 = arith.mulf %215, %225 : vector<8x128xf32>
    %227 = arith.addf %224, %226 : vector<8x128xf32>
    %228 = math.tanh %227 : vector<8x128xf32>
    %229 = arith.subf %199, %228 : vector<8x128xf32>
    %230 = arith.mulf %223, %229 : vector<8x128xf32>
    %231 = arith.addf %230, %228 : vector<8x128xf32>
    %c6 = arith.constant 6 : index
    %c0_45 = arith.constant 0 : index
    %c0_46 = arith.constant 0 : index
    %232 = vector.load %arg13[%c6, %c0_45, %c0_46] : memref<8x8x128xf32, #tpu.memory_space<vmem>>, vector<1x8x128xf32>
    %233 = vector.shape_cast %232 : vector<1x8x128xf32> to vector<8x128xf32>
    %234 = vector.shape_cast %231 : vector<8x128xf32> to vector<1x8x128xf32>
    tpu.vector_store %arg13[%c6, %c0_45, %c0_46], %234 {strides = array<i32>} : memref<8x8x128xf32, #tpu.memory_space<vmem>>, vector<1x8x128xf32>,
    %235 = vector.extract_strided_slice %7 {offsets = [7, 0, 0], sizes = [1, 8, 384], strides = [1, 1, 1]} : vector<8x8x384xf32> to vector<1x8x384xf32>
    %236 = vector.shape_cast %235 : vector<1x8x384xf32> to vector<8x384xf32>
    %cst_47 = arith.constant dense<0.000000e+00> : vector<8x384xf32>
    %237 = tpu.matmul %231, %8, %cst_47 {dimension_numbers = #tpu.dot_dimension_numbers<[1], [0], [0], [1], [0, 0, 1, 1], [], []>} : vector<8x128xf32>, vector<128x384xf32>, vector<8x384xf32> -> vector<8x384xf32>
    %238 = vector.broadcast %9 : vector<1x384xf32> to vector<8x384xf32>
    %239 = arith.addf %237, %238 : vector<8x384xf32>
    %240 = vector.extract_strided_slice %236 {offsets = [0, 0], sizes = [8, 128], strides = [1, 1]} : vector<8x384xf32> to vector<8x128xf32>
    %241 = vector.extract_strided_slice %239 {offsets = [0, 0], sizes = [8, 128], strides = [1, 1]} : vector<8x384xf32> to vector<8x128xf32>
    %242 = arith.addf %240, %241 : vector<8x128xf32>
    %243 = arith.negf %242 : vector<8x128xf32>
    %244 = math.exp %243 : vector<8x128xf32>
    %cst_48 = arith.constant 1.000000e+00 : f32
    %245 = vector.broadcast %cst_48 : f32 to vector<8x128xf32>
    %246 = arith.addf %245, %244 : vector<8x128xf32>
    %247 = arith.divf %245, %246 : vector<8x128xf32>
    %248 = vector.extract_strided_slice %236 {offsets = [0, 128], sizes = [8, 128], strides = [1, 1]} : vector<8x384xf32> to vector<8x128xf32>
    %249 = vector.extract_strided_slice %239 {offsets = [0, 128], sizes = [8, 128], strides = [1, 1]} : vector<8x384xf32> to vector<8x128xf32>
    %250 = arith.addf %248, %249 : vector<8x128xf32>
    %251 = arith.negf %250 : vector<8x128xf32>
    %252 = math.exp %251 : vector<8x128xf32>
    %cst_49 = arith.constant 1.000000e+00 : f32
    %253 = vector.broadcast %cst_49 : f32 to vector<8x128xf32>
    %254 = arith.addf %253, %252 : vector<8x128xf32>
    %255 = arith.divf %253, %254 : vector<8x128xf32>
    %256 = vector.extract_strided_slice %236 {offsets = [0, 256], sizes = [8, 128], strides = [1, 1]} : vector<8x384xf32> to vector<8x128xf32>
    %257 = vector.extract_strided_slice %239 {offsets = [0, 256], sizes = [8, 128], strides = [1, 1]} : vector<8x384xf32> to vector<8x128xf32>
    %258 = arith.mulf %247, %257 : vector<8x128xf32>
    %259 = arith.addf %256, %258 : vector<8x128xf32>
    %260 = math.tanh %259 : vector<8x128xf32>
    %261 = arith.subf %231, %260 : vector<8x128xf32>
    %262 = arith.mulf %255, %261 : vector<8x128xf32>
    %263 = arith.addf %262, %260 : vector<8x128xf32>
    %c7 = arith.constant 7 : index
    %c0_50 = arith.constant 0 : index
    %c0_51 = arith.constant 0 : index
    %264 = vector.load %arg13[%c7, %c0_50, %c0_51] : memref<8x8x128xf32, #tpu.memory_space<vmem>>, vector<1x8x128xf32>
    %265 = vector.shape_cast %264 : vector<1x8x128xf32> to vector<8x128xf32>
    %266 = vector.shape_cast %263 : vector<8x128xf32> to vector<1x8x128xf32>
    tpu.vector_store %arg13[%c7, %c0_50, %c0_51], %266 {strides = array<i32>} : memref<8x8x128xf32, #tpu.memory_space<vmem>>, vector<1x8x128xf32>,
    %c0_52 = arith.constant 0 : index
    %c0_53 = arith.constant 0 : index
    %267 = vector.load %arg7[%c0_52, %c0_53] : memref<128x128xf32, #tpu.memory_space<vmem>>, vector<128x128xf32>
    %cst_54 = arith.constant dense<0.000000e+00> : vector<8x128xf32>
    %268 = tpu.matmul %263, %267, %cst_54 {dimension_numbers = #tpu.dot_dimension_numbers<[1], [0], [0], [1], [0, 0, 1, 1], [], []>} : vector<8x128xf32>, vector<128x128xf32>, vector<8x128xf32> -> vector<8x128xf32>
    %c0_55 = arith.constant 0 : index
    %c0_56 = arith.constant 0 : index
    %269 = vector.load %arg8[%c0_55, %c0_56] : memref<1x128xf32, #tpu.memory_space<vmem>>, vector<1x128xf32>
    %270 = vector.broadcast %269 : vector<1x128xf32> to vector<8x128xf32>
    %271 = arith.addf %268, %270 : vector<8x128xf32>
    %272 = math.tanh %271 : vector<8x128xf32>
    %c0_57 = arith.constant 0 : index
    %c0_58 = arith.constant 0 : index
    %273 = vector.load %arg9[%c0_57, %c0_58] : memref<1x128xf32, #tpu.memory_space<vmem>>, vector<1x128xf32>
    %274 = vector.broadcast %273 : vector<1x128xf32> to vector<8x128xf32>
    %275 = arith.mulf %272, %274 : vector<8x128xf32>
    %c0_59 = arith.constant 0 : index
    %c0_60 = arith.constant 0 : index
    %276 = memref.load %arg10[%c0_59, %c0_60] : memref<1x1xf32, #tpu.memory_space<smem>>
    %c0_61 = arith.constant 0 : index
    %c0_62 = arith.constant 0 : index
    %c0_63 = arith.constant 0 : index
    %277 = vector.load %arg13[%c0_61, %c0_62, %c0_63] : memref<8x8x128xf32, #tpu.memory_space<vmem>>, vector<1x8x128xf32>
    %278 = vector.shape_cast %277 : vector<1x8x128xf32> to vector<8x128xf32>
    %279 = arith.mulf %278, %275 : vector<8x128xf32>
    %cst_64 = arith.constant dense<0.000000e+00> : vector<8xf32>
    %280 = vector.multi_reduction <add>, %279, %cst_64 [1] : vector<8x128xf32> to vector<8xf32>
    %281 = vector.broadcast %276 : f32 to vector<8xf32>
    %282 = arith.addf %280, %281 : vector<8xf32>
    %283 = vector.shape_cast %282 : vector<8xf32> to vector<1x8xf32>
    %c1_65 = arith.constant 1 : index
    %c0_66 = arith.constant 0 : index
    %c0_67 = arith.constant 0 : index
    %284 = vector.load %arg13[%c1_65, %c0_66, %c0_67] : memref<8x8x128xf32, #tpu.memory_space<vmem>>, vector<1x8x128xf32>
    %285 = vector.shape_cast %284 : vector<1x8x128xf32> to vector<8x128xf32>
    %286 = arith.mulf %285, %275 : vector<8x128xf32>
    %cst_68 = arith.constant dense<0.000000e+00> : vector<8xf32>
    %287 = vector.multi_reduction <add>, %286, %cst_68 [1] : vector<8x128xf32> to vector<8xf32>
    %288 = vector.broadcast %276 : f32 to vector<8xf32>
    %289 = arith.addf %287, %288 : vector<8xf32>
    %290 = vector.shape_cast %289 : vector<8xf32> to vector<1x8xf32>
    %c2_69 = arith.constant 2 : index
    %c0_70 = arith.constant 0 : index
    %c0_71 = arith.constant 0 : index
    %291 = vector.load %arg13[%c2_69, %c0_70, %c0_71] : memref<8x8x128xf32, #tpu.memory_space<vmem>>, vector<1x8x128xf32>
    %292 = vector.shape_cast %291 : vector<1x8x128xf32> to vector<8x128xf32>
    %293 = arith.mulf %292, %275 : vector<8x128xf32>
    %cst_72 = arith.constant dense<0.000000e+00> : vector<8xf32>
    %294 = vector.multi_reduction <add>, %293, %cst_72 [1] : vector<8x128xf32> to vector<8xf32>
    %295 = vector.broadcast %276 : f32 to vector<8xf32>
    %296 = arith.addf %294, %295 : vector<8xf32>
    %297 = vector.shape_cast %296 : vector<8xf32> to vector<1x8xf32>
    %c3_73 = arith.constant 3 : index
    %c0_74 = arith.constant 0 : index
    %c0_75 = arith.constant 0 : index
    %298 = vector.load %arg13[%c3_73, %c0_74, %c0_75] : memref<8x8x128xf32, #tpu.memory_space<vmem>>, vector<1x8x128xf32>
    %299 = vector.shape_cast %298 : vector<1x8x128xf32> to vector<8x128xf32>
    %300 = arith.mulf %299, %275 : vector<8x128xf32>
    %cst_76 = arith.constant dense<0.000000e+00> : vector<8xf32>
    %301 = vector.multi_reduction <add>, %300, %cst_76 [1] : vector<8x128xf32> to vector<8xf32>
    %302 = vector.broadcast %276 : f32 to vector<8xf32>
    %303 = arith.addf %301, %302 : vector<8xf32>
    %304 = vector.shape_cast %303 : vector<8xf32> to vector<1x8xf32>
    %c4_77 = arith.constant 4 : index
    %c0_78 = arith.constant 0 : index
    %c0_79 = arith.constant 0 : index
    %305 = vector.load %arg13[%c4_77, %c0_78, %c0_79] : memref<8x8x128xf32, #tpu.memory_space<vmem>>, vector<1x8x128xf32>
    %306 = vector.shape_cast %305 : vector<1x8x128xf32> to vector<8x128xf32>
    %307 = arith.mulf %306, %275 : vector<8x128xf32>
    %cst_80 = arith.constant dense<0.000000e+00> : vector<8xf32>
    %308 = vector.multi_reduction <add>, %307, %cst_80 [1] : vector<8x128xf32> to vector<8xf32>
    %309 = vector.broadcast %276 : f32 to vector<8xf32>
    %310 = arith.addf %308, %309 : vector<8xf32>
    %311 = vector.shape_cast %310 : vector<8xf32> to vector<1x8xf32>
    %c5_81 = arith.constant 5 : index
    %c0_82 = arith.constant 0 : index
    %c0_83 = arith.constant 0 : index
    %312 = vector.load %arg13[%c5_81, %c0_82, %c0_83] : memref<8x8x128xf32, #tpu.memory_space<vmem>>, vector<1x8x128xf32>
    %313 = vector.shape_cast %312 : vector<1x8x128xf32> to vector<8x128xf32>
    %314 = arith.mulf %313, %275 : vector<8x128xf32>
    %cst_84 = arith.constant dense<0.000000e+00> : vector<8xf32>
    %315 = vector.multi_reduction <add>, %314, %cst_84 [1] : vector<8x128xf32> to vector<8xf32>
    %316 = vector.broadcast %276 : f32 to vector<8xf32>
    %317 = arith.addf %315, %316 : vector<8xf32>
    %318 = vector.shape_cast %317 : vector<8xf32> to vector<1x8xf32>
    %c6_85 = arith.constant 6 : index
    %c0_86 = arith.constant 0 : index
    %c0_87 = arith.constant 0 : index
    %319 = vector.load %arg13[%c6_85, %c0_86, %c0_87] : memref<8x8x128xf32, #tpu.memory_space<vmem>>, vector<1x8x128xf32>
    %320 = vector.shape_cast %319 : vector<1x8x128xf32> to vector<8x128xf32>
    %321 = arith.mulf %320, %275 : vector<8x128xf32>
    %cst_88 = arith.constant dense<0.000000e+00> : vector<8xf32>
    %322 = vector.multi_reduction <add>, %321, %cst_88 [1] : vector<8x128xf32> to vector<8xf32>
    %323 = vector.broadcast %276 : f32 to vector<8xf32>
    %324 = arith.addf %322, %323 : vector<8xf32>
    %325 = vector.shape_cast %324 : vector<8xf32> to vector<1x8xf32>
    %c7_89 = arith.constant 7 : index
    %c0_90 = arith.constant 0 : index
    %c0_91 = arith.constant 0 : index
    %326 = vector.load %arg13[%c7_89, %c0_90, %c0_91] : memref<8x8x128xf32, #tpu.memory_space<vmem>>, vector<1x8x128xf32>
    %327 = vector.shape_cast %326 : vector<1x8x128xf32> to vector<8x128xf32>
    %328 = arith.mulf %327, %275 : vector<8x128xf32>
    %cst_92 = arith.constant dense<0.000000e+00> : vector<8xf32>
    %329 = vector.multi_reduction <add>, %328, %cst_92 [1] : vector<8x128xf32> to vector<8xf32>
    %330 = vector.broadcast %276 : f32 to vector<8xf32>
    %331 = arith.addf %329, %330 : vector<8xf32>
    %332 = vector.shape_cast %331 : vector<8xf32> to vector<1x8xf32>
    %333 = tpu.concatenate %283, %290, %297, %304, %311, %318, %325, %332 in 0 : vector<1x8xf32>, vector<1x8xf32>, vector<1x8xf32>, vector<1x8xf32>, vector<1x8xf32>, vector<1x8xf32>, vector<1x8xf32>, vector<1x8xf32> -> vector<8x8xf32>
    %c0_93 = arith.constant 0 : index
    %c0_94 = arith.constant 0 : index
    %334 = vector.load %arg11[%c0_93, %c0_94] : memref<8x8xf32, #tpu.memory_space<vmem>>, vector<8x8xf32>
    tpu.vector_store %arg11[%c0_93, %c0_94], %333 {strides = array<i32>} : memref<8x8xf32, #tpu.memory_space<vmem>>, vector<8x8xf32>,
    %c0_95 = arith.constant 0 : index
    %c0_96 = arith.constant 0 : index
    %335 = vector.load %arg2[%c0_95, %c0_96] : memref<8x8xf32, #tpu.memory_space<vmem>>, vector<8x8xf32>
    %cst_97 = arith.constant 0.000000e+00 : f32
    %336 = vector.broadcast %cst_97 : f32 to vector<8x8xf32>
    %337 = arith.maximumf %333, %336 : vector<8x8xf32>
    %338 = arith.mulf %333, %335 : vector<8x8xf32>
    %339 = arith.subf %337, %338 : vector<8x8xf32>
    %340 = math.absf %333 : vector<8x8xf32>
    %cst_98 = arith.constant 0.000000e+00 : f32
    %341 = vector.broadcast %cst_98 : f32 to vector<8x8xf32>
    %342 = arith.subf %341, %340 : vector<8x8xf32>
    %343 = math.exp %342 : vector<8x8xf32>
    %cst_99 = arith.constant 1.000000e+00 : f32
    %344 = vector.broadcast %cst_99 : f32 to vector<8x8xf32>
    %345 = arith.addf %344, %343 : vector<8x8xf32>
    %346 = math.log %345 : vector<8x8xf32>
    %347 = arith.addf %339, %346 : vector<8x8xf32>
    %348 = tpu.iota {dimensions = array<i32: 1>} : vector<1x8xi32>
    %c8_i32 = arith.constant 8 : i32
    %349 = arith.muli %arg0, %c8_i32 : i32
    %350 = vector.broadcast %349 : i32 to vector<1x8xi32>
    %351 = arith.addi %348, %350 : vector<1x8xi32>
    %c2_i32 = arith.constant 2 : i32
    %352 = vector.broadcast %c2_i32 : i32 to vector<1x8xi32>
    %353 = arith.cmpi slt, %351, %352 : vector<1x8xi32>
    %354 = arith.extui %353 : vector<1x8xi1> to vector<1x8xi32>
    %355 = arith.sitofp %354 : vector<1x8xi32> to vector<1x8xf32>
    %356 = vector.broadcast %355 : vector<1x8xf32> to vector<8x8xf32>
    %357 = arith.mulf %347, %356 : vector<8x8xf32>
    %358 = vector.shape_cast %357 : vector<8x8xf32> to vector<1x8x8xf32>
    %cst_100 = arith.constant dense<0.000000e+00> : vector<1xf32>
    %359 = vector.multi_reduction <add>, %358, %cst_100 [1, 2] : vector<1x8x8xf32> to vector<1xf32>
    %360 = vector.shape_cast %359 : vector<1xf32> to vector<1x1x1xf32>
    %361 = vector.extract %360[0, 0, 0] : f32 from vector<1x1x1xf32>
    %c0_101 = arith.constant 0 : index
    %c0_102 = arith.constant 0 : index
    %362 = memref.load %arg12[%c0_101, %c0_102] : memref<1x1xf32, #tpu.memory_space<smem>>
    memref.store %361, %arg12[%c0_101, %c0_102] : memref<1x1xf32, #tpu.memory_space<smem>>
    return
  }
  func.func @transform_0(%arg0: i32) -> (i32, i32, i32) {
    %c0_i32 = arith.constant 0 : i32
    %c0_i32_0 = arith.constant 0 : i32
    %c0_i32_1 = arith.constant 0 : i32
    return %c0_i32, %arg0, %c0_i32_0 : i32, i32, i32
  }
  func.func @transform_1(%arg0: i32) -> (i32, i32) {
    %c0_i32 = arith.constant 0 : i32
    %c0_i32_0 = arith.constant 0 : i32
    return %c0_i32, %arg0 : i32, i32
  }
  func.func @transform_2(%arg0: i32) -> (i32, i32) {
    %c0_i32 = arith.constant 0 : i32
    %c0_i32_0 = arith.constant 0 : i32
    %c0_i32_1 = arith.constant 0 : i32
    return %c0_i32, %c0_i32_0 : i32, i32
  }
  func.func @transform_3(%arg0: i32) -> (i32, i32) {
    %c0_i32 = arith.constant 0 : i32
    %c0_i32_0 = arith.constant 0 : i32
    %c0_i32_1 = arith.constant 0 : i32
    return %c0_i32, %c0_i32_0 : i32, i32
  }
  func.func @transform_4(%arg0: i32) -> (i32, i32) {
    %c0_i32 = arith.constant 0 : i32
    %c0_i32_0 = arith.constant 0 : i32
    %c0_i32_1 = arith.constant 0 : i32
    return %c0_i32, %c0_i32_0 : i32, i32
  }
  func.func @transform_5(%arg0: i32) -> (i32, i32) {
    %c0_i32 = arith.constant 0 : i32
    %c0_i32_0 = arith.constant 0 : i32
    %c0_i32_1 = arith.constant 0 : i32
    return %c0_i32, %c0_i32_0 : i32, i32
  }
  func.func @transform_6(%arg0: i32) -> (i32, i32) {
    %c0_i32 = arith.constant 0 : i32
    %c0_i32_0 = arith.constant 0 : i32
    %c0_i32_1 = arith.constant 0 : i32
    return %c0_i32, %c0_i32_0 : i32, i32
  }
  func.func @transform_7(%arg0: i32) -> (i32, i32) {
    %c0_i32 = arith.constant 0 : i32
    %c0_i32_0 = arith.constant 0 : i32
    %c0_i32_1 = arith.constant 0 : i32
    return %c0_i32, %c0_i32_0 : i32, i32
  }
  func.func @transform_8(%arg0: i32) -> (i32, i32) {
    %c0_i32 = arith.constant 0 : i32
    %c0_i32_0 = arith.constant 0 : i32
    %c0_i32_1 = arith.constant 0 : i32
    return %c0_i32, %c0_i32_0 : i32, i32
  }
  func.func @transform_9(%arg0: i32) -> (i32, i32) {
    %c0_i32 = arith.constant 0 : i32
    %c0_i32_0 = arith.constant 0 : i32
    %c0_i32_1 = arith.constant 0 : i32
    return %c0_i32, %c0_i32_0 : i32, i32
  }
  func.func @transform_10(%arg0: i32) -> (i32, i32) {
    %c0_i32 = arith.constant 0 : i32
    %c0_i32_0 = arith.constant 0 : i32
    return %c0_i32, %arg0 : i32, i32
  }
  func.func @transform_11(%arg0: i32) -> (i32, i32) {
    %c0_i32 = arith.constant 0 : i32
    %c0_i32_0 = arith.constant 0 : i32
    return %arg0, %c0_i32 : i32, i32
  }
}

</mosaic_0001>

<bundles_post_ra>
// kernel: dlcm_forward.1
= control target key start
LH: loop header
LB: loop body
LE: loop exit
PB: predicated region body
PF: predicated region fallthrough
CT: control target
= control target key end

     0   :  { %v4063_v4 = vmov 0.0   ;;  %vm76_vm0 = vcmask 261120   ;;  %s4050_s0 = inlined_call_operand.vmem [shape: f32[8,8,32], index: 0, kind: input, shape index: {}]   ;;  %s4051_s1 = inlined_call_operand.vmem [shape: f32[8,8], index: 1, kind: input, shape index: {}]   ;;  %s4052_s2 = inlined_call_operand.vmem [shape: f32[128,384], index: 2, kind: input, shape index: {}]   ;;  %s4053_s3 = inlined_call_operand.vmem [shape: f32[128,384], index: 3, kind: input, shape index: {}]   ;;  %s4054_s4 = inlined_call_operand.vmem [shape: f32[1,384], index: 4, kind: input, shape index: {}]   ;;  %s4055_s5 = inlined_call_operand.vmem [shape: f32[1,384], index: 5, kind: input, shape index: {}]   ;;  %s4056_s6 = inlined_call_operand.vmem [shape: f32[128,128], index: 6, kind: input, shape index: {}]   ;;  %s4057_s7 = inlined_call_operand.vmem [shape: f32[1,128], index: 7, kind: input, shape index: {}]   ;;  %s4058_s8 = inlined_call_operand.vmem [shape: f32[1,128], index: 8, kind: input, shape index: {}]   ;;  %s4059_s9 = inlined_call_operand.<no memory space> [shape: f32[1,1], index: 9, kind: input, shape index: {}]   ;;  %s4060_s10 = inlined_call_operand.vmem [shape: f32[8,8], index: 10, kind: output, shape index: {0}]   ;;  %s4061_s11 = inlined_call_operand.hbm [shape: f32[1,1], index: 11, kind: output, shape index: {1}]  }
   0x1   :  { %v57_v0 = vld [vmem:[%s4052_s2 + $0x50] sm:$0xff]  ;;  %v56_v1 = vld [vmem:[%s4052_s2 + $0x48] sm:$0xff]  ;;  %v54_v2 = vld [vmem:[%s4052_s2 + $0x38] sm:$0xff]  ;;  %165 = vmatprep.mubr.f32.mxu0 %v4063_v4 }
   0x2   :  { %125 = vmatprep.subr.mxu0 %v57_v0  ;;  %v53_v3 = vld [vmem:[%s4052_s2 + $0x30] sm:$0xff]  ;;  %v51_v5 = vld [vmem:[%s4052_s2 + $0x20] sm:$0xff]  ;;  %v50_v7 = vld [vmem:[%s4052_s2 + $0x18] sm:$0xff] }
   0x3   :  { %126 = vmatpush1.msra.mxu0 %v56_v1  ;;  %v39_v6 = vld [vmem:[%s4050_s0] sm:$0xff]  ;;  %v48_v8 = vld [vmem:[%s4052_s2 + $0x8] sm:$0xff]  ;;  %v2724_v10 = vld [vmem:[%s4053_s3 + $0x170] sm:$0xff] }
   0x4   :  { %127 = vmatprep.subr.mxu0 %v54_v2  ;;  %2153 = vmatprep.mubr.msk.f32.mxu1 %vm76_vm0, %v39_v6  ;;  %v47_v9 = vld [vmem:[%s4052_s2] sm:$0xff]  ;;  %4094 = vst [vmem:[#allocation7_spill] sm:$0xff] %v2724_v10  ;;  %v2729_v11 = vld [vmem:[%s4053_s3 + $0x168] sm:$0xff]  ;;  %v2734_v12 = vld [vmem:[%s4053_s3 + $0x158] sm:$0xff] }
   0x5   :  { %128 = vmatpush1.msra.mxu0 %v53_v3  ;;  %v2741_v13 = vld [vmem:[%s4053_s3 + $0x150] sm:$0xff]  ;;  %v2748_v14 = vld [vmem:[%s4050_s0 + $0x8] sm:$0xff]  ;;  %v2753_v15 = vld [vmem:[%s4053_s3 + $0x140] sm:$0xff] }
   0x6   :  { %129 = vmatprep.subr.mxu0 %v51_v5  ;;  %v2759_v16 = vld [vmem:[%s4053_s3 + $0x138] sm:$0xff]  ;;  %v2765_v17 = vld [vmem:[%s4053_s3 + $0x128] sm:$0xff]  ;;  %v2773_v18 = vld [vmem:[%s4053_s3 + $0x120] sm:$0xff] }
   0x7   :  { %130 = vmatpush1.msra.mxu0 %v50_v7  ;;  %v58_v19 = vld [vmem:[%s4052_s2 + $0x58] sm:$0xff]  ;;  %v2783_v20 = vld [vmem:[%s4050_s0 + $0x10] sm:$0xff]  ;;  %v2794_v22 = vld [vmem:[%s4053_s3 + $0x108] sm:$0xff] }
   0x8   :  { %131 = vmatprep.subr.mxu0 %v48_v8  ;;  %v2788_v21 = vld [vmem:[%s4053_s3 + $0x110] sm:$0xff]  ;;  %2145 = vmatprep.subr.mxu1 %v58_v19  ;;  %v2800_v23 = vld [vmem:[%s4053_s3 + $0xf8] sm:$0xff]  ;;  %v55_v24 = vld [vmem:[%s4052_s2 + $0x40] sm:$0xff] }
   0x9   :  { %132 = vmatpush1.msra.mxu0 %v47_v9  ;;  %2146 = vmatpush3.msra.mxu1 %v58_v19  ;;  %v2811_v25 = vld [vmem:[%s4053_s3 + $0xf0] sm:$0xff]  ;;  %v2818_v26 = vld [vmem:[%s4050_s0 + $0x18] sm:$0xff]  ;;  %v2823_v27 = vld [vmem:[%s4053_s3 + $0xe0] sm:$0xff] }
   0xa   :  { %1945 = vmatmul.mubr.msk.f32.vlgmr.msra.gmra.mxu0 %vm76_vm0, %v39_v6  ;;  %384 = vmatprep.subr.mxu0 %v2724_v10  ;;  %v2829_v28 = vld [vmem:[%s4053_s3 + $0xd8] sm:$0xff]  ;;  %v2835_v29 = vld [vmem:[%s4053_s3 + $0xc8] sm:$0xff]  ;;  %v2846_v31 = vld [vmem:[%s4053_s3 + $0xc0] sm:$0xff] }
   0xb   :  { %385 = vmatpush1.msra.mxu0 %v2729_v11  ;;  %171 = vmatprep.mubr.f32.mxu0 %v4063_v4  ;;  %v52_v30 = vld [vmem:[%s4052_s2 + $0x28] sm:$0xff]  ;;  %v2853_v32 = vld [vmem:[%s4050_s0 + $0x20] sm:$0xff]  ;;  %v2858_v33 = vld [vmem:[%s4053_s3 + $0xb0] sm:$0xff] }
   0xc   :  { %386 = vmatprep.subr.mxu0 %v2734_v12  ;;  %2147 = vmatprep.subr.mxu1 %v55_v24  ;;  %v2864_v34 = vld [vmem:[%s4053_s3 + $0xa8] sm:$0xff] }
   0xd   :  { %387 = vmatpush1.msra.mxu0 %v2741_v13  ;;  %2148 = vmatpush3.msra.mxu1 %v55_v24 }
   0xe   :  { %1946 = vmatmul.mubr.msk.f32.gmra.mxu0 %vm76_vm0, %v2748_v14  ;;  %388 = vmatprep.subr.mxu0 %v2753_v15 }
   0xf   :  { %389 = vmatpush1.msra.mxu0 %v2759_v16  ;;  %177 = vmatprep.mubr.f32.mxu0 %v4063_v4 }
  0x10   :  { %390 = vmatprep.subr.mxu0 %v2765_v17  ;;  %2149 = vmatprep.subr.mxu1 %v52_v30 }
  0x11   :  { %391 = vmatpush1.msra.mxu0 %v2773_v18 }
  0x12   :  { %1947 = vmatmul.mubr.msk.f32.gmra.mxu0 %vm76_vm0, %v2783_v20  ;;  %392 = vmatprep.subr.mxu0 %v2788_v21 }
  0x13   :  { %393 = vmatpush1.msra.mxu0 %v2794_v22  ;;  %183 = vmatprep.mubr.f32.mxu0 %v4063_v4 }
  0x14   :  { %394 = vmatprep.subr.mxu0 %v2800_v23 }
  0x15   :  { %395 = vmatpush1.msra.mxu0 %v2811_v25 }
  0x16   :  { %1948 = vmatmul.mubr.msk.f32.gmra.mxu0 %vm76_vm0, %v2818_v26  ;;  %396 = vmatprep.subr.mxu0 %v2823_v27 }
  0x17   :  { %397 = vmatpush1.msra.mxu0 %v2829_v28  ;;  %189 = vmatprep.mubr.f32.mxu0 %v4063_v4 }
  0x18   :  { %398 = vmatprep.subr.mxu0 %v2835_v29 }
  0x19   :  { %18 = vsyncpa [#allocation5], 0  ;;  %399 = vmatpush1.msra.mxu0 %v2846_v31  ;;  %v2870_v35 = vld [vmem:[%s4053_s3 + $0x98] sm:$0xff]  ;;  %2150 = vmatpush3.msra.mxu1 %v52_v30  ;;  %v49_v36 = vld [vmem:[%s4052_s2 + $0x10] sm:$0xff]  ;;  %vm2630_vm1 = vmmov 0   ;;  %v4062_v6 = vlaneseq  ;;  %vm1881_vm2 = vcmask 1040384  }
  0x1a   :  { %1949 = vmatmul.mubr.msk.f32.gmra.mxu0 %vm76_vm0, %v2853_v32  ;;  %400 = vmatprep.subr.mxu0 %v2858_v33  ;;  %v2881_v37 = vld [vmem:[%s4053_s3 + $0x90] sm:$0xff]  ;;  %v2888_v38 = vld [vmem:[%s4050_s0 + $0x28] sm:$0xff]  ;;  %v2893_v39 = vld [vmem:[%s4053_s3 + $0x80] sm:$0xff]  ;;  %vm1883_vm3 = vcmask 1041408   ;;  %vm1885_vm4 = vcmask 1042432   ;;  %vm1887_vm5 = vcmask 1043456  }
  0x1b   :  { %401 = vmatpush1.msra.mxu0 %v2864_v34  ;;  %195 = vmatprep.mubr.f32.mxu0 %v4063_v4  ;;  %v2899_v40 = vld [vmem:[%s4053_s3 + $0x78] sm:$0xff]  ;;  %v2905_v41 = vld [vmem:[%s4053_s3 + $0x68] sm:$0xff]  ;;  %v2913_v42 = vld [vmem:[%s4053_s3 + $0x60] sm:$0xff]  ;;  %v3175_v7 = vshrl.u32 %v4062_v6, 7  ;;  %vm1889_vm6 = vcmask 1044480   ;;  %vm1891_vm7 = vcmask 1045504  }
  0x1c   :  { %402 = vmatprep.subr.mxu0 %v2870_v35  ;;  %2151 = vmatprep.subr.mxu1 %v49_v36  ;;  %v45_v43 = vld [vmem:[%s4050_s0 + $0x30] sm:$0xff]  ;;  %v2929_v45 = vld [vmem:[%s4053_s3 + $0x48] sm:$0xff]  ;;  %v2936_v46 = vld [vmem:[%s4053_s3 + $0x38] sm:$0xff]  ;;  %vm1893_vm8 = vcmask 1046528   ;;  %vm1895_vm9 = vcmask 64512  }
  0x1d   :  { %403 = vmatpush1.msra.mxu0 %v2881_v37  ;;  %2152 = vmatpush3.msra.mxu1 %v49_v36  ;;  %v2923_v44 = vld [vmem:[%s4053_s3 + $0x50] sm:$0xff]  ;;  %v2943_v47 = vld [vmem:[%s4053_s3 + $0x178] sm:$0xff]  ;;  %v2960_v50 = vld [vmem:[%s4053_s3 + $0x20] sm:$0xff]  ;;  %4102 = vst [vmem:[#allocation15_spill] sm:$0xff] %v3175_v7  ;;  %v63_v8 = vsub.s32 0, %v3175_v7  ;;  %v67_v19 = vsub.s32 1, %v3175_v7 }
  0x1e   :  { %1950 = vmatmul.mubr.msk.f32.gmra.mxu0 %vm76_vm0, %v2888_v38  ;;  %404 = vmatprep.subr.mxu0 %v2893_v39  ;;  %v2950_v48 = vld [vmem:[%s4053_s3 + $0x30] sm:$0xff]  ;;  %v46_v49 = vld [vmem:[%s4050_s0 + $0x38] sm:$0xff]  ;;  %4095 = vst [vmem:[#allocation8_spill] sm:$0xff] %v2960_v50  ;;  %v2973_v52 = vld [vmem:[%s4053_s3 + $0x8] sm:$0xff] }
  0x1f   :  { %405 = vmatpush1.msra.mxu0 %v2899_v40  ;;  %201 = vmatprep.mubr.f32.mxu0 %v4063_v4  ;;  %v2966_v51 = vld [vmem:[%s4053_s3 + $0x18] sm:$0xff]  ;;  %4097 = vst [vmem:[#allocation10_spill] sm:$0xff] %v2973_v52  ;;  %v2979_v53 = vld [vmem:[%s4053_s3 + $0x160] sm:$0xff]  ;;  %v2993_v55 = vld [vmem:[%s4053_s3 + $0x148] sm:$0xff] }
  0x20   :  { %406 = vmatprep.subr.mxu0 %v2905_v41  ;;  %2165 = vmatprep.subr.mxu1 %v4063_v4  ;;  %4096 = vst [vmem:[#allocation9_spill] sm:$0xff] %v2966_v51  ;;  %v2986_v54 = vld [vmem:[%s4053_s3] sm:$0xff]  ;;  %v3002_v56 = vld [vmem:[%s4053_s3 + $0x130] sm:$0xff]  ;;  %v3010_v57 = vld [vmem:[%s4053_s3 + $0x118] sm:$0xff] }
  0x21   :  { %407 = vmatpush1.msra.mxu0 %v2913_v42  ;;  %2154 = vmatmul.mubr.msk.f32.vlgmr.msra.gmra.mxu1 %vm76_vm0, %v2748_v14  ;;  %4098 = vst [vmem:[#allocation11_spill] sm:$0xff] %v2986_v54  ;;  %v3020_v58 = vld [vmem:[%s4053_s3 + $0x100] sm:$0xff]  ;;  %v3031_v59 = vld [vmem:[%s4053_s3 + $0xe8] sm:$0xff]  ;;  %v3040_v60 = vld [vmem:[%s4053_s3 + $0xd0] sm:$0xff] }
  0x22   :  { %1951 = vmatmul.mubr.msk.f32.gmra.mxu0 %vm76_vm0, %v45_v43  ;;  %408 = vmatprep.subr.mxu0 %v2923_v44  ;;  %v3050_v61 = vld [vmem:[%s4053_s3 + $0xb8] sm:$0xff]  ;;  %v3059_v62 = vld [vmem:[%s4053_s3 + $0xa0] sm:$0xff]  ;;  %v3069_v63 = vld [vmem:[%s4053_s3 + $0x88] sm:$0xff] }
  0x23   :  { %409 = vmatpush1.msra.mxu0 %v2929_v45  ;;  %207 = vmatprep.mubr.f32.mxu0 %v4063_v4  ;;  %v3078_v0 = vld [vmem:[%s4053_s3 + $0x70] sm:$0xff]  ;;  %v3087_v1 = vld [vmem:[%s4053_s3 + $0x58] sm:$0xff]  ;;  %v3096_v2 = vld [vmem:[%s4053_s3 + $0x40] sm:$0xff] }
  0x24   :  { %410 = vmatprep.subr.mxu0 %v2936_v46  ;;  %2166 = vmatpush3.msra.mxu1 %v2943_v47  ;;  %4099 = vst [vmem:[#allocation12_spill] sm:$0xff] %v3096_v2  ;;  %v3105_v3 = vld [vmem:[%s4053_s3 + $0x28] sm:$0xff]  ;;  %v3114_v5 = vld [vmem:[%s4053_s3 + $0x10] sm:$0xff]  ;;  %v59_v9 = vld [vmem:[%s4054_s4] sm:$0x7] }
  0x25   :  { %411 = vmatpush1.msra.mxu0 %v2950_v48  ;;  %2167 = vmatprep.subr.mxu1 %v4063_v4  ;;  %4100 = vst [vmem:[#allocation13_spill] sm:$0xff] %v3105_v3  ;;  %4101 = vst [vmem:[#allocation14_spill] sm:$0xff] %v3114_v5  ;;  %v64_v24 = vrot.slane %v59_v9, %v63_v8  ;;  %v68_v30 = vrot.slane %v59_v9, %v67_v19 }
  0x26   :  { %1952 = vmatmul.mubr.msk.f32.gmra.mxu0 %vm76_vm0, %v46_v49  ;;  %412 = vmatprep.subr.mxu0 %v2960_v50 }
  0x27   :  { %413 = vmatpush1.msra.mxu0 %v2966_v51  ;;  %448 = vmatprep.mubr.f32.mxu0 %v4063_v4 }
  0x28   :  { %414 = vmatprep.subr.mxu0 %v2973_v52  ;;  %2168 = vmatpush3.msra.mxu1 %v2979_v53 }
  0x29   :  { %415 = vmatpush1.msra.mxu0 %v2986_v54  ;;  %2169 = vmatprep.subr.mxu1 %v4063_v4 }
  0x2a   :  { %449 = vmatmul.mubr.f32.vlgmr.msra.gmra.mxu0 %v4063_v4  ;;  %2170 = vmatpush3.msra.mxu1 %v2993_v55 }
  0x2b   :  { %2171 = vmatprep.subr.mxu1 %v4063_v4  ;;  %2156 = vmatprep.mubr.msk.f32.mxu1 %vm76_vm0, %v2783_v20 }
  0x2c   :  { %2172 = vmatpush3.msra.mxu1 %v3002_v56  ;;  %546 = vmatprep.subr.mxu0 %v2724_v10 }
  0x2d   :  { %2173 = vmatprep.subr.mxu1 %v4063_v4  ;;  %2157 = vmatmul.mubr.msk.f32.gmra.mxu1 %vm76_vm0, %v2818_v26 }
  0x2e   :  { %2174 = vmatpush3.msra.mxu1 %v3010_v57  ;;  %2159 = vmatprep.mubr.msk.f32.mxu1 %vm76_vm0, %v2853_v32 }
  0x2f   :  { %2175 = vmatprep.subr.mxu1 %v4063_v4  ;;  %547 = vmatpush1.msra.mxu0 %v2729_v11 }
  0x30   :  { %2176 = vmatpush3.msra.mxu1 %v3020_v58  ;;  %548 = vmatprep.subr.mxu0 %v2734_v12 }
  0x31   :  { %2177 = vmatprep.subr.mxu1 %v4063_v4  ;;  %2160 = vmatmul.mubr.msk.f32.gmra.mxu1 %vm76_vm0, %v2888_v38 }
  0x32   :  { %2178 = vmatpush3.msra.mxu1 %v3031_v59  ;;  %2162 = vmatprep.mubr.msk.f32.mxu1 %vm76_vm0, %v45_v43 }
  0x33   :  { %2179 = vmatprep.subr.mxu1 %v4063_v4  ;;  %549 = vmatpush1.msra.mxu0 %v2741_v13 }
  0x34   :  { %2180 = vmatpush3.msra.mxu1 %v3040_v60  ;;  %550 = vmatprep.subr.mxu0 %v2753_v15 }
  0x35   :  { %2181 = vmatprep.subr.mxu1 %v4063_v4  ;;  %2163 = vmatmul.mubr.msk.f32.gmra.mxu1 %vm76_vm0, %v46_v49 }
  0x36   :  { %2182 = vmatpush3.msra.mxu1 %v3050_v61  ;;  %2197 = vmatprep.mubr.msk.f32.mxu1 %vm2630_vm1, %v4063_v4 }
  0x37   :  { %2183 = vmatprep.subr.mxu1 %v4063_v4  ;;  %551 = vmatpush1.msra.mxu0 %v2759_v16 }
  0x38   :  { %2184 = vmatpush3.msra.mxu1 %v3059_v62  ;;  %552 = vmatprep.subr.mxu0 %v2765_v17 }
  0x39   :  { %2185 = vmatprep.subr.mxu1 %v4063_v4  ;;  %553 = vmatpush1.msra.mxu0 %v2773_v18 }
  0x3a   :  { %2186 = vmatpush3.msra.mxu1 %v3069_v63  ;;  %554 = vmatprep.subr.mxu0 %v2788_v21 }
  0x3b   :  { %2187 = vmatprep.subr.mxu1 %v4063_v4  ;;  %555 = vmatpush1.msra.mxu0 %v2794_v22 }
  0x3c   :  { %2188 = vmatpush3.msra.mxu1 %v3078_v0  ;;  %556 = vmatprep.subr.mxu0 %v2800_v23 }
  0x3d   :  { %2189 = vmatprep.subr.mxu1 %v4063_v4  ;;  %557 = vmatpush1.msra.mxu0 %v2811_v25 }
  0x3e   :  { %2190 = vmatpush3.msra.mxu1 %v3087_v1  ;;  %558 = vmatprep.subr.mxu0 %v2823_v27 }
  0x3f   :  { %2191 = vmatprep.subr.mxu1 %v4063_v4  ;;  %559 = vmatpush1.msra.mxu0 %v2829_v28 }
  0x40   :  { %2192 = vmatpush3.msra.mxu1 %v3096_v2  ;;  %560 = vmatprep.subr.mxu0 %v2835_v29 }
  0x41   :  { %2193 = vmatprep.subr.mxu1 %v4063_v4  ;;  %561 = vmatpush1.msra.mxu0 %v2846_v31 }
  0x42   :  { %2194 = vmatpush3.msra.mxu1 %v3105_v3  ;;  %562 = vmatprep.subr.mxu0 %v2858_v33 }
  0x43   :  { %2195 = vmatprep.subr.mxu1 %v4063_v4  ;;  %563 = vmatpush1.msra.mxu0 %v2864_v34 }
  0x44   :  { %2196 = vmatpush3.msra.mxu1 %v3114_v5  ;;  %564 = vmatprep.subr.mxu0 %v2870_v35 }
  0x45   :  { %2198 = vmatmul.mubr.f32.vlgmr.msra.gmra.mxu1 %v4063_v4  ;;  %2200 = vmatprep.subr.mxu1 %v4063_v4 }
  0x46   :  { %2201 = vmatpush3.msra.mxu1 %v2943_v47  ;;  %565 = vmatpush1.msra.mxu0 %v2881_v37 }
  0x47   :  { %2202 = vmatprep.subr.mxu1 %v4063_v4  ;;  %566 = vmatprep.subr.mxu0 %v2893_v39 }
  0x48   :  { %2203 = vmatpush3.msra.mxu1 %v2979_v53  ;;  %567 = vmatpush1.msra.mxu0 %v2899_v40 }
  0x49   :  { %2204 = vmatprep.subr.mxu1 %v4063_v4  ;;  %568 = vmatprep.subr.mxu0 %v2905_v41 }
  0x4a   :  { %2205 = vmatpush3.msra.mxu1 %v2993_v55  ;;  %569 = vmatpush1.msra.mxu0 %v2913_v42 }
  0x4b   :  { %2206 = vmatprep.subr.mxu1 %v4063_v4  ;;  %570 = vmatprep.subr.mxu0 %v2923_v44 }
  0x4c   :  { %2207 = vmatpush3.msra.mxu1 %v3002_v56  ;;  %571 = vmatpush1.msra.mxu0 %v2929_v45 }
  0x4d   :  { %2208 = vmatprep.subr.mxu1 %v4063_v4  ;;  %572 = vmatprep.subr.mxu0 %v2936_v46 }
  0x4e   :  { %2209 = vmatpush3.msra.mxu1 %v3010_v57  ;;  %573 = vmatpush1.msra.mxu0 %v2950_v48 }
  0x4f   :  { %2210 = vmatprep.subr.mxu1 %v4063_v4  ;;  %574 = vmatprep.subr.mxu0 %v2960_v50 }
  0x50   :  { %2211 = vmatpush3.msra.mxu1 %v3020_v58  ;;  %575 = vmatpush1.msra.mxu0 %v2966_v51  ;;  %v71_v51 = vsub.s32 2, %v3175_v7 }
  0x51   :  { %2212 = vmatprep.subr.mxu1 %v4063_v4  ;;  %576 = vmatprep.subr.mxu0 %v2973_v52 }
  0x52   :  { %2213 = vmatpush3.msra.mxu1 %v3031_v59  ;;  %577 = vmatpush1.msra.mxu0 %v2986_v54 }
  0x53   :  { %2214 = vmatprep.subr.mxu1 %v4063_v4  ;;  %610 = vmatprep.mubr.f32.mxu0 %v4063_v4 }
  0x54   :  { %2215 = vmatpush3.msra.mxu1 %v3040_v60  ;;  %2232 = vmatprep.mubr.msk.f32.mxu1 %vm2630_vm1, %v4063_v4 }
  0x55   :  { %2216 = vmatprep.subr.mxu1 %v4063_v4  ;;  %709 = vmatprep.subr.mxu0 %v2724_v10 }
  0x56   :  { %2217 = vmatpush3.msra.mxu1 %v3050_v61 }
  0x57   :  { %2218 = vmatprep.subr.mxu1 %v4063_v4 }
  0x58   :  { %2219 = vmatpush3.msra.mxu1 %v3059_v62 }
  0x59   :  { %2220 = vmatprep.subr.mxu1 %v4063_v4 }
  0x5a   :  { %2221 = vmatpush3.msra.mxu1 %v3069_v63 }
  0x5b   :  { %2222 = vmatprep.subr.mxu1 %v4063_v4 }
  0x5c   :  { %2223 = vmatpush3.msra.mxu1 %v3078_v0 }
  0x5d   :  { %2224 = vmatprep.subr.mxu1 %v4063_v4 }
  0x5e   :  { %2225 = vmatpush3.msra.mxu1 %v3087_v1 }
  0x5f   :  { %2226 = vmatprep.subr.mxu1 %v4063_v4 }
  0x60   :  { %2227 = vmatpush3.msra.mxu1 %v3096_v2 }
  0x61   :  { %2228 = vmatprep.subr.mxu1 %v4063_v4 }
  0x62   :  { %2229 = vmatpush3.msra.mxu1 %v3105_v3 }
  0x63   :  { %2230 = vmatprep.subr.mxu1 %v4063_v4 }
  0x64   :  { %2231 = vmatpush3.msra.mxu1 %v3114_v5 }
  0x65   :  { %2235 = vmatprep.subr.mxu1 %v4063_v4 }
  0xca   :  { %v167_v14 = vpop.f32.mrf.mxu0 }
  0xcc   :  { %v169_v20 = vpop.f32.mrf.mxu0 }
  0xce   :  { %v173_v26 = vpop.f32.mrf.mxu0 }
  0xcf   :  { %v3182_v32 = vadd.f32 %v173_v26, %v64_v24 }
  0xd0   :  { %v175_v36 = vpop.f32.mrf.mxu0 }
  0xd1   :  { %4103 = vst [vmem:[#allocation16_spill] sm:$0xff] %v3182_v32  ;;  %v3184_v38 = vadd.f32 %v175_v36, %v68_v30 }
  0xd2   :  { %v179_v43 = vpop.f32.mrf.mxu0 }
  0xd3   :  { %4104 = vst [vmem:[#allocation17_spill] sm:$0xff] %v3184_v38  ;;  %v3186_v49 = vadd.f32 %v179_v43, %v64_v24  ;;  %v72_v43 = vrot.slane %v59_v9, %v71_v51 }
  0xd4   :  { %v181_v6 = vpop.f32.mrf.mxu0 }
  0xd5   :  { %4105 = vst [vmem:[#allocation18_spill] sm:$0xff] %v3186_v49  ;;  %v3188_v4 = vadd.f32 %v181_v6, %v68_v30 }
  0xd6   :  { %v185_v10 = vpop.f32.mrf.mxu0 }
  0xd7   :  { %4106 = vst [vmem:[#allocation19_spill] sm:$0xff] %v3188_v4  ;;  %v3190_v5 = vadd.f32 %v185_v10, %v64_v24 }
  0xd8   :  { %v187_v54 = vpop.f32.mrf.mxu0 }
  0xd9   :  { %4107 = vst [vmem:[#allocation20_spill] sm:$0xff] %v3190_v5  ;;  %v3192_v52 = vadd.f32 %v187_v54, %v68_v30 }
  0xda   :  { %v191_v3 = vpop.f32.mrf.mxu0 }
  0xdb   :  { %4108 = vst [vmem:[#allocation21_spill] sm:$0xff] %v3192_v52  ;;  %v3195_v26 = vadd.f32 %v191_v3, %v64_v24  ;;  %v367_v3 = vld [vmem:[%s4055_s5] sm:$0x7] }
  0xdc   :  { %v193_v32 = vpop.f32.mrf.mxu0 }
  0xdd   :  { %4109 = vst [vmem:[#allocation22_spill] sm:$0xff] %v3195_v26  ;;  %v3197_v36 = vadd.f32 %v193_v32, %v68_v30 }
  0xde   :  { %v197_v38 = vpop.f32.mrf.mxu0 }
  0xdf   :  { %4110 = vst [vmem:[#allocation23_spill] sm:$0xff] %v3197_v36  ;;  %v3199_v49 = vadd.f32 %v197_v38, %v64_v24  ;;  %v3214_v38 = vrot.slane %v367_v3, %v63_v8 }
  0xe0   :  { %v199_v6 = vpop.f32.mrf.mxu0 }
  0xe1   :  { %4111 = vst [vmem:[#allocation24_spill] sm:$0xff] %v3199_v49  ;;  %v3201_v4 = vadd.f32 %v199_v6, %v68_v30  ;;  %v2155_v10 = vpop.f32.mrf.mxu1  ;;  %4117 = vst [vmem:[#allocation30_spill] sm:$0xff] %v3214_v38 }
  0xe2   :  { %v203_v5 = vpop.f32.mrf.mxu0  ;;  %v3203_v50 = vadd.f32 %v2155_v10, %v72_v43  ;;  %v168_v10 = vadd.f32 %v167_v14, %v64_v24 }
  0xe3   :  { %4112 = vst [vmem:[#allocation25_spill] sm:$0xff] %v3201_v4  ;;  %v3205_v54 = vadd.f32 %v203_v5, %v64_v24 }
  0xe4   :  { %4113 = vst [vmem:[#allocation26_spill] sm:$0xff] %v3203_v50  ;;  %v205_v52 = vpop.f32.mrf.mxu0 }
  0xe5   :  { %4114 = vst [vmem:[#allocation27_spill] sm:$0xff] %v3205_v54  ;;  %v3210_v32 = vadd.f32 %v205_v52, %v68_v30  ;;  %v280_v54 = vpop.f32.mrf.mxu1 }
  0xe6   :  { %v209_v7 = vpop.f32.mrf.mxu0 }
  0xe7   :  { %4115 = vst [vmem:[#allocation28_spill] sm:$0xff] %v3210_v32  ;;  %v3212_v9 = vadd.f32 %v209_v7, %v64_v24  ;;  %v3221_v32 = vrot.slane %v367_v3, %v67_v19 }
  0xe8   :  { %v211_v6 = vpop.f32.mrf.mxu0 }
  0xe9   :  { %4116 = vst [vmem:[#allocation29_spill] sm:$0xff] %v3212_v9  ;;  %v3216_v4 = vadd.f32 %v211_v6, %v68_v30 }
  0xea   :  { %v450_v49 = vpop.f32.mrf.mxu0 }
  0xeb   :  { %4118 = vst [vmem:[#allocation31_spill] sm:$0xff] %v3216_v4  ;;  %v451_v5 = vadd.f32 %v450_v49, %v3214_v38 }
  0xec   :  { %v452_v8 = vpop.f32.mrf.mxu0 }
  0xed   :  { %v525_v36 = vadd.f32 %v451_v5, %v168_v10  ;;  %v2158_v26 = vpop.f32.mrf.mxu1  ;;  %v453_v14 = vadd.f32 %v452_v8, %v3221_v32  ;;  %v170_v10 = vadd.f32 %v169_v20, %v68_v30  ;;  %v281_v20 = vadd.f32 %v280_v54, %v72_v43  ;;  %v4128_v54 = vld [vmem:[#allocation8_spill] sm:$0xff] }
  0xee   :  { %v3219_v50 = vadd.f32 %v2158_v26, %v72_v43 }
  0xef   :  { %v1961_v2 = vmul.f32 -1.442695, %v525_v36  ;;  %v290_v52 = vpop.f32.mrf.mxu1  ;;  %v532_v5 = vadd.f32 %v453_v14, %v170_v10 }
  0xf0   :  { %4119 = vst [vmem:[#allocation32_spill] sm:$0xff] %v3219_v50  ;;  %v3223_v7 = vadd.f32 %v290_v52, %v72_v43 }
  0xf1   :  { %2485 = vpow2.f32 %v1961_v2  ;;  %v2161_v9 = vpop.f32.mrf.mxu1  ;;  %v1962_v52 = vmul.f32 -1.442695, %v532_v5 }
  0xf2   :  { %4120 = vst [vmem:[#allocation33_spill] sm:$0xff] %v3223_v7  ;;  %v3225_v6 = vadd.f32 %v2161_v9, %v72_v43 }
  0xf3   :  { %v300_v4 = vpop.f32.mrf.mxu1  ;;  %2487 = vpow2.f32 %v1962_v52  ;;  %v4133_v52 = vld [vmem:[#allocation14_spill] sm:$0xff] }
  0xf4   :  { %4121 = vst [vmem:[#allocation34_spill] sm:$0xff] %v3225_v6  ;;  %v3228_v24 = vadd.f32 %v300_v4, %v72_v43  ;;  %v3234_v6 = vrot.slane %v367_v3, %v71_v51  ;;  %v4126_v51 = vmov 0.0   ;;  %v4129_v3 = vld [vmem:[#allocation9_spill] sm:$0xff] }
  0xf5   :  { %v2164_v49 = vpop.f32.mrf.mxu1 }
  0xf6   :  { %4122 = vst [vmem:[#allocation35_spill] sm:$0xff] %v3228_v24  ;;  %v3230_v26 = vadd.f32 %v2164_v49, %v72_v43 }
  0xf7   :  { %v310_v36 = vpop.f32.mrf.mxu1 }
  0xf8   :  { %4123 = vst [vmem:[#allocation36_spill] sm:$0xff] %v3230_v26  ;;  %v3232_v19 = vadd.f32 %v310_v36, %v72_v43  ;;  %v4127_v43 = vld [vmem:[#allocation12_spill] sm:$0xff] }
  0xfa   :  { %4124 = vst [vmem:[#allocation37_spill] sm:$0xff] %v3232_v19 }
  0xfe   :  { %v2486_v50 = vpop.eup %2485 }
  0xff   :  { %v529_v2 = vadd.f32 1.0, %v2486_v50 }
 0x100   :  { %v2488_v8 = vpop.eup %2487 }
 0x101   :  { %2489 = vrcp.f32 %v529_v2  ;;  %v536_v49 = vadd.f32 1.0, %v2488_v8  ;;  %v4134_v2 = vld [vmem:[#allocation7_spill] sm:$0xff] }
 0x105   :  { %v521_v9 = vpop.f32.mrf.mxu1 }
 0x106   :  { %v522_v4 = vadd.f32 %v521_v9, %v3234_v6 }
 0x107   :  { %v2199_v7 = vpop.f32.mrf.mxu1 }
 0x108   :  { %v4130_v7 = vld [vmem:[#allocation13_spill] sm:$0xff] }
 0x10e   :  { %v2490_v24 = vpop.eup %2489 }
 0x10f   :  { %v539_v30 = vmul.f32 %v2490_v24, %v522_v4  ;;  %v4131_v24 = vld [vmem:[#allocation10_spill] sm:$0xff] }
 0x111   :  { %v540_v26 = vadd.f32 %v539_v30, %v281_v20  ;;  %v4135_v30 = vld [vmem:[#allocation16_spill] sm:$0xff] }
 0x113   :  { %2491 = vtanh.f32 %v540_v26  ;;  %v4132_v26 = vld [vmem:[#allocation11_spill] sm:$0xff] }
 0x114   :  { %2493 = vrcp.f32 %v536_v49 }
 0x120   :  { %v2492_v14 = vpop.eup %2491 }
 0x121   :  { %v542_v10 = vsub.f32 0.0, %v2492_v14  ;;  %v2494_v36 = vpop.eup %2493 }
 0x123   :  { %v543_v50 = vmul.f32 %v2494_v36, %v542_v10 }
 0x125   :  { %v3237_v5 = vadd.f32 %v2492_v14, %v543_v50  ;;  %v4136_v50 = vld [vmem:[#allocation17_spill] sm:$0xff] }
 0x127   :  { %4125 = vst [vmem:[#allocation38_spill] sm:$0xff] %v3237_v5  ;;  %611 = vmatmul.mubr.f32.vlgmr.msra.gmra.mxu0 %v3237_v5  ;;  %2233 = vmatmul.mubr.f32.vlgmr.msra.gmra.mxu1 %v3237_v5 }
 0x128   :  { %710 = vmatpush1.msra.mxu0 %v2729_v11  ;;  %2236 = vmatpush3.msra.mxu1 %v2943_v47 }
 0x129   :  { %711 = vmatprep.subr.mxu0 %v2734_v12  ;;  %2237 = vmatprep.subr.mxu1 %v4126_v51 }
 0x12a   :  { %712 = vmatpush1.msra.mxu0 %v2741_v13  ;;  %2238 = vmatpush3.msra.mxu1 %v2979_v53 }
 0x12b   :  { %713 = vmatprep.subr.mxu0 %v2753_v15  ;;  %2239 = vmatprep.subr.mxu1 %v4126_v51 }
 0x12c   :  { %714 = vmatpush1.msra.mxu0 %v2759_v16  ;;  %2240 = vmatpush3.msra.mxu1 %v2993_v55 }
 0x12d   :  { %715 = vmatprep.subr.mxu0 %v2765_v17  ;;  %2241 = vmatprep.subr.mxu1 %v4126_v51 }
 0x12e   :  { %716 = vmatpush1.msra.mxu0 %v2773_v18  ;;  %2242 = vmatpush3.msra.mxu1 %v3002_v56 }
 0x12f   :  { %717 = vmatprep.subr.mxu0 %v2788_v21  ;;  %2243 = vmatprep.subr.mxu1 %v4126_v51 }
 0x130   :  { %718 = vmatpush1.msra.mxu0 %v2794_v22  ;;  %2244 = vmatpush3.msra.mxu1 %v3010_v57 }
 0x131   :  { %719 = vmatprep.subr.mxu0 %v2800_v23  ;;  %2245 = vmatprep.subr.mxu1 %v4126_v51 }
 0x132   :  { %720 = vmatpush1.msra.mxu0 %v2811_v25  ;;  %2246 = vmatpush3.msra.mxu1 %v3020_v58 }
 0x133   :  { %721 = vmatprep.subr.mxu0 %v2823_v27  ;;  %2247 = vmatprep.subr.mxu1 %v4126_v51 }
 0x134   :  { %722 = vmatpush1.msra.mxu0 %v2829_v28  ;;  %2248 = vmatpush3.msra.mxu1 %v3031_v59 }
 0x135   :  { %723 = vmatprep.subr.mxu0 %v2835_v29  ;;  %2249 = vmatprep.subr.mxu1 %v4126_v51 }
 0x136   :  { %724 = vmatpush1.msra.mxu0 %v2846_v31  ;;  %2250 = vmatpush3.msra.mxu1 %v3040_v60 }
 0x137   :  { %725 = vmatprep.subr.mxu0 %v2858_v33  ;;  %2251 = vmatprep.subr.mxu1 %v4126_v51 }
 0x138   :  { %726 = vmatpush1.msra.mxu0 %v2864_v34  ;;  %2252 = vmatpush3.msra.mxu1 %v3050_v61 }
 0x139   :  { %727 = vmatprep.subr.mxu0 %v2870_v35  ;;  %2253 = vmatprep.subr.mxu1 %v4126_v51 }
 0x13a   :  { %728 = vmatpush1.msra.mxu0 %v2881_v37  ;;  %2254 = vmatpush3.msra.mxu1 %v3059_v62 }
 0x13b   :  { %729 = vmatprep.subr.mxu0 %v2893_v39  ;;  %2255 = vmatprep.subr.mxu1 %v4126_v51 }
 0x13c   :  { %730 = vmatpush1.msra.mxu0 %v2899_v40  ;;  %2256 = vmatpush3.msra.mxu1 %v3069_v63 }
 0x13d   :  { %731 = vmatprep.subr.mxu0 %v2905_v41  ;;  %2257 = vmatprep.subr.mxu1 %v4126_v51 }
 0x13e   :  { %732 = vmatpush1.msra.mxu0 %v2913_v42  ;;  %2258 = vmatpush3.msra.mxu1 %v3078_v0 }
 0x13f   :  { %733 = vmatprep.subr.mxu0 %v2923_v44  ;;  %2259 = vmatprep.subr.mxu1 %v4126_v51 }
 0x140   :  { %734 = vmatpush1.msra.mxu0 %v2929_v45  ;;  %2260 = vmatpush3.msra.mxu1 %v3087_v1 }
 0x141   :  { %735 = vmatprep.subr.mxu0 %v2936_v46  ;;  %2261 = vmatprep.subr.mxu1 %v4126_v51 }
 0x142   :  { %736 = vmatpush1.msra.mxu0 %v2950_v48  ;;  %2262 = vmatpush3.msra.mxu1 %v4127_v43 }
 0x143   :  { %737 = vmatprep.subr.mxu0 %v4128_v54  ;;  %2263 = vmatprep.subr.mxu1 %v4126_v51 }
 0x144   :  { %738 = vmatpush1.msra.mxu0 %v4129_v3  ;;  %2264 = vmatpush3.msra.mxu1 %v4130_v7 }
 0x145   :  { %739 = vmatprep.subr.mxu0 %v4131_v24  ;;  %2265 = vmatprep.subr.mxu1 %v4126_v51 }
 0x146   :  { %740 = vmatpush1.msra.mxu0 %v4132_v26  ;;  %773 = vmatprep.mubr.f32.mxu0 %v4126_v51 }
 0x147   :  { %2266 = vmatpush3.msra.mxu1 %v4133_v52  ;;  %2267 = vmatprep.mubr.msk.f32.mxu1 %vm2630_vm1, %v4126_v51 }
 0x148   :  { %872 = vmatprep.subr.mxu0 %v4134_v2  ;;  %2270 = vmatprep.subr.mxu1 %v4126_v51 }
 0x1e7   :  { %v612_v9 = vpop.f32.mrf.mxu0  ;;  %v683_v4 = vpop.f32.mrf.mxu1 }
 0x1e8   :  { %v613_v8 = vadd.f32 %v612_v9, %v3214_v38  ;;  %v684_v7 = vadd.f32 %v683_v4, %v3234_v6 }
 0x1e9   :  { %v2234_v20 = vpop.f32.mrf.mxu1  ;;  %v614_v10 = vpop.f32.mrf.mxu0 }
 0x1ea   :  { %v687_v49 = vadd.f32 %v613_v8, %v4135_v30  ;;  %v615_v36 = vadd.f32 %v614_v10, %v3221_v32  ;;  %v4137_v20 = vld [vmem:[#allocation26_spill] sm:$0xff] }
 0x1ec   :  { %v1963_v14 = vmul.f32 -1.442695, %v687_v49  ;;  %v694_v19 = vadd.f32 %v615_v36, %v4136_v50  ;;  %v4145_v36 = vld [vmem:[#allocation30_spill] sm:$0xff] }
 0x1ee   :  { %2495 = vpow2.f32 %v1963_v14  ;;  %v1964_v52 = vmul.f32 -1.442695, %v694_v19 }
 0x1f0   :  { %2497 = vpow2.f32 %v1964_v52  ;;  %v4144_v52 = vld [vmem:[#allocation7_spill] sm:$0xff] }
 0x1fb   :  { %v2496_v26 = vpop.eup %2495 }
 0x1fc   :  { %v691_v24 = vadd.f32 1.0, %v2496_v26  ;;  %v4143_v26 = vld [vmem:[#allocation14_spill] sm:$0xff] }
 0x1fd   :  { %v2498_v2 = vpop.eup %2497 }
 0x1fe   :  { %2499 = vrcp.f32 %v691_v24  ;;  %v698_v8 = vadd.f32 1.0, %v2498_v2  ;;  %v4142_v24 = vld [vmem:[#allocation11_spill] sm:$0xff] }
 0x20b   :  { %v2500_v3 = vpop.eup %2499 }
 0x20c   :  { %v701_v9 = vmul.f32 %v2500_v3, %v684_v7  ;;  %v4140_v3 = vld [vmem:[#allocation13_spill] sm:$0xff]  ;;  %v4141_v7 = vld [vmem:[#allocation10_spill] sm:$0xff] }
 0x20e   :  { %v702_v38 = vadd.f32 %v701_v9, %v4137_v20  ;;  %v4146_v20 = vld [vmem:[#allocation18_spill] sm:$0xff] }
 0x210   :  { %2501 = vtanh.f32 %v702_v38  ;;  %v4139_v38 = vld [vmem:[#allocation9_spill] sm:$0xff] }
 0x211   :  { %2503 = vrcp.f32 %v698_v8 }
 0x21d   :  { %v2502_v30 = vpop.eup %2501 }
 0x21e   :  { %v704_v49 = vsub.f32 %v3237_v5, %v2502_v30  ;;  %v2504_v14 = vpop.eup %2503 }
 0x220   :  { %v705_v10 = vmul.f32 %v2504_v14, %v704_v49 }
 0x222   :  { %v3315_v19 = vadd.f32 %v2502_v30, %v705_v10  ;;  %v4147_v10 = vld [vmem:[#allocation19_spill] sm:$0xff] }
 0x224   :  { %4138 = vst [vmem:[#allocation12_spill] sm:$0xff] %v3315_v19  ;;  %774 = vmatmul.mubr.f32.vlgmr.msra.gmra.mxu0 %v3315_v19  ;;  %2268 = vmatmul.mubr.f32.vlgmr.msra.gmra.mxu1 %v3315_v19 }
 0x225   :  { %873 = vmatpush1.msra.mxu0 %v2729_v11  ;;  %2271 = vmatpush3.msra.mxu1 %v2943_v47 }
 0x226   :  { %874 = vmatprep.subr.mxu0 %v2734_v12  ;;  %2272 = vmatprep.subr.mxu1 %v4126_v51 }
 0x227   :  { %875 = vmatpush1.msra.mxu0 %v2741_v13  ;;  %2273 = vmatpush3.msra.mxu1 %v2979_v53 }
 0x228   :  { %876 = vmatprep.subr.mxu0 %v2753_v15  ;;  %2274 = vmatprep.subr.mxu1 %v4126_v51 }
 0x229   :  { %877 = vmatpush1.msra.mxu0 %v2759_v16  ;;  %2275 = vmatpush3.msra.mxu1 %v2993_v55 }
 0x22a   :  { %878 = vmatprep.subr.mxu0 %v2765_v17  ;;  %2276 = vmatprep.subr.mxu1 %v4126_v51 }
 0x22b   :  { %879 = vmatpush1.msra.mxu0 %v2773_v18  ;;  %2277 = vmatpush3.msra.mxu1 %v3002_v56 }
 0x22c   :  { %880 = vmatprep.subr.mxu0 %v2788_v21  ;;  %2278 = vmatprep.subr.mxu1 %v4126_v51 }
 0x22d   :  { %881 = vmatpush1.msra.mxu0 %v2794_v22  ;;  %2279 = vmatpush3.msra.mxu1 %v3010_v57 }
 0x22e   :  { %882 = vmatprep.subr.mxu0 %v2800_v23  ;;  %2280 = vmatprep.subr.mxu1 %v4126_v51 }
 0x22f   :  { %883 = vmatpush1.msra.mxu0 %v2811_v25  ;;  %2281 = vmatpush3.msra.mxu1 %v3020_v58 }
 0x230   :  { %884 = vmatprep.subr.mxu0 %v2823_v27  ;;  %2282 = vmatprep.subr.mxu1 %v4126_v51 }
 0x231   :  { %885 = vmatpush1.msra.mxu0 %v2829_v28  ;;  %2283 = vmatpush3.msra.mxu1 %v3031_v59 }
 0x232   :  { %886 = vmatprep.subr.mxu0 %v2835_v29  ;;  %2284 = vmatprep.subr.mxu1 %v4126_v51 }
 0x233   :  { %887 = vmatpush1.msra.mxu0 %v2846_v31  ;;  %2285 = vmatpush3.msra.mxu1 %v3040_v60 }
 0x234   :  { %888 = vmatprep.subr.mxu0 %v2858_v33  ;;  %2286 = vmatprep.subr.mxu1 %v4126_v51 }
 0x235   :  { %889 = vmatpush1.msra.mxu0 %v2864_v34  ;;  %2287 = vmatpush3.msra.mxu1 %v3050_v61 }
 0x236   :  { %890 = vmatprep.subr.mxu0 %v2870_v35  ;;  %2288 = vmatprep.subr.mxu1 %v4126_v51 }
 0x237   :  { %891 = vmatpush1.msra.mxu0 %v2881_v37  ;;  %2289 = vmatpush3.msra.mxu1 %v3059_v62 }
 0x238   :  { %892 = vmatprep.subr.mxu0 %v2893_v39  ;;  %2290 = vmatprep.subr.mxu1 %v4126_v51 }
 0x239   :  { %893 = vmatpush1.msra.mxu0 %v2899_v40  ;;  %2291 = vmatpush3.msra.mxu1 %v3069_v63 }
 0x23a   :  { %894 = vmatprep.subr.mxu0 %v2905_v41  ;;  %2292 = vmatprep.subr.mxu1 %v4126_v51 }
 0x23b   :  { %895 = vmatpush1.msra.mxu0 %v2913_v42  ;;  %2293 = vmatpush3.msra.mxu1 %v3078_v0 }
 0x23c   :  { %896 = vmatprep.subr.mxu0 %v2923_v44  ;;  %2294 = vmatprep.subr.mxu1 %v4126_v51 }
 0x23d   :  { %897 = vmatpush1.msra.mxu0 %v2929_v45  ;;  %2295 = vmatpush3.msra.mxu1 %v3087_v1 }
 0x23e   :  { %898 = vmatprep.subr.mxu0 %v2936_v46  ;;  %2296 = vmatprep.subr.mxu1 %v4126_v51 }
 0x23f   :  { %899 = vmatpush1.msra.mxu0 %v2950_v48  ;;  %2297 = vmatpush3.msra.mxu1 %v4127_v43 }
 0x240   :  { %900 = vmatprep.subr.mxu0 %v4128_v54  ;;  %2298 = vmatprep.subr.mxu1 %v4126_v51 }
 0x241   :  { %901 = vmatpush1.msra.mxu0 %v4139_v38  ;;  %2299 = vmatpush3.msra.mxu1 %v4140_v3 }
 0x242   :  { %902 = vmatprep.subr.mxu0 %v4141_v7  ;;  %2300 = vmatprep.subr.mxu1 %v4126_v51 }
 0x243   :  { %903 = vmatpush1.msra.mxu0 %v4142_v24  ;;  %936 = vmatprep.mubr.f32.mxu0 %v4126_v51 }
 0x244   :  { %2301 = vmatpush3.msra.mxu1 %v4143_v26  ;;  %2302 = vmatprep.mubr.msk.f32.mxu1 %vm2630_vm1, %v4126_v51 }
 0x245   :  { %1035 = vmatprep.subr.mxu0 %v4144_v52  ;;  %2305 = vmatprep.subr.mxu1 %v4126_v51 }
 0x2e4   :  { %v775_v2 = vpop.f32.mrf.mxu0  ;;  %v846_v4 = vpop.f32.mrf.mxu1 }
 0x2e5   :  { %v776_v50 = vadd.f32 %v775_v2, %v4145_v36  ;;  %v847_v3 = vadd.f32 %v846_v4, %v3234_v6  ;;  %v3495_v4 = vld [vmem:[%s4053_s3 + $0x158] sm:$0xff] }
 0x2e6   :  { %v2269_v9 = vpop.f32.mrf.mxu1  ;;  %v777_v49 = vpop.f32.mrf.mxu0 }
 0x2e7   :  { %v850_v8 = vadd.f32 %v776_v50, %v4146_v20  ;;  %v778_v14 = vadd.f32 %v777_v49, %v3221_v32  ;;  %v4148_v9 = vld [vmem:[#allocation33_spill] sm:$0xff] }
 0x2e9   :  { %v1965_v30 = vmul.f32 -1.442695, %v850_v8  ;;  %v857_v5 = vadd.f32 %v778_v14, %v4147_v10  ;;  %v3508_v14 = vld [vmem:[%s4053_s3 + $0x160] sm:$0xff] }
 0x2ea   :  { %v3514_v10 = vld [vmem:[%s4053_s3 + $0x140] sm:$0xff] }
 0x2eb   :  { %2505 = vpow2.f32 %v1965_v30  ;;  %v1966_v26 = vmul.f32 -1.442695, %v857_v5 }
 0x2ed   :  { %2507 = vpow2.f32 %v1966_v26  ;;  %v3489_v26 = vld [vmem:[%s4053_s3 + $0x178] sm:$0xff] }
 0x2f8   :  { %v2506_v24 = vpop.eup %2505 }
 0x2f9   :  { %v854_v7 = vadd.f32 1.0, %v2506_v24  ;;  %v3483_v24 = vld [vmem:[%s4053_s3 + $0x168] sm:$0xff] }
 0x2fa   :  { %v2508_v52 = vpop.eup %2507 }
 0x2fb   :  { %2509 = vrcp.f32 %v854_v7  ;;  %v861_v50 = vadd.f32 1.0, %v2508_v52  ;;  %v3521_v52 = vld [vmem:[%s4053_s3 + $0x138] sm:$0xff] }
 0x308   :  { %v2510_v38 = vpop.eup %2509 }
 0x309   :  { %v864_v2 = vmul.f32 %v2510_v38, %v847_v3 }
 0x30b   :  { %v865_v36 = vadd.f32 %v864_v2, %v4148_v9  ;;  %v3528_v2 = vld [vmem:[%s4053_s3 + $0x128] sm:$0xff]  ;;  %v3535_v9 = vld [vmem:[%s4053_s3 + $0x120] sm:$0xff] }
 0x30d   :  { %2511 = vtanh.f32 %v865_v36  ;;  %v3502_v36 = vld [vmem:[%s4053_s3 + $0x150] sm:$0xff] }
 0x30e   :  { %2513 = vrcp.f32 %v861_v50  ;;  %v3549_v50 = vld [vmem:[%s4053_s3 + $0x108] sm:$0xff] }
 0x31a   :  { %v2512_v20 = vpop.eup %2511 }
 0x31b   :  { %v867_v8 = vsub.f32 %v3315_v19, %v2512_v20  ;;  %v2514_v30 = vpop.eup %2513 }
 0x31d   :  { %v868_v49 = vmul.f32 %v2514_v30, %v867_v8  ;;  %v3577_v8 = vld [vmem:[%s4053_s3 + $0xd8] sm:$0xff]  ;;  %v3591_v30 = vld [vmem:[%s4053_s3 + $0xc0] sm:$0xff] }
 0x31f   :  { %v3393_v5 = vadd.f32 %v2512_v20, %v868_v49  ;;  %v3563_v20 = vld [vmem:[%s4053_s3 + $0xf0] sm:$0xff]  ;;  %v3605_v49 = vld [vmem:[%s4053_s3 + $0xa8] sm:$0xff] }
 0x321   :  { %4149 = vst [vmem:[#allocation8_spill] sm:$0xff] %v3393_v5  ;;  %937 = vmatmul.mubr.f32.vlgmr.msra.gmra.mxu0 %v3393_v5  ;;  %2303 = vmatmul.mubr.f32.vlgmr.msra.gmra.mxu1 %v3393_v5 }
 0x322   :  { %1036 = vmatpush1.msra.mxu0 %v2729_v11  ;;  %2306 = vmatpush3.msra.mxu1 %v2943_v47  ;;  %v4150_v11 = vld [vmem:[#allocation9_spill] sm:$0xff] }
 0x323   :  { %1037 = vmatprep.subr.mxu0 %v2734_v12  ;;  %2307 = vmatprep.subr.mxu1 %v4126_v51  ;;  %v4151_v12 = vld [vmem:[#allocation13_spill] sm:$0xff] }
 0x324   :  { %1038 = vmatpush1.msra.mxu0 %v2741_v13  ;;  %2308 = vmatpush3.msra.mxu1 %v2979_v53  ;;  %v4152_v13 = vld [vmem:[#allocation10_spill] sm:$0xff] }
 0x325   :  { %1039 = vmatprep.subr.mxu0 %v2753_v15  ;;  %2309 = vmatprep.subr.mxu1 %v4126_v51  ;;  %v4153_v15 = vld [vmem:[#allocation11_spill] sm:$0xff] }
 0x326   :  { %1040 = vmatpush1.msra.mxu0 %v2759_v16  ;;  %2310 = vmatpush3.msra.mxu1 %v2993_v55  ;;  %v4154_v16 = vld [vmem:[#allocation14_spill] sm:$0xff] }
 0x327   :  { %1041 = vmatprep.subr.mxu0 %v2765_v17  ;;  %2311 = vmatprep.subr.mxu1 %v4126_v51  ;;  %v3465_v17 = vld [vmem:[%s4053_s3 + $0x170] sm:$0xff] }
 0x328   :  { %1042 = vmatpush1.msra.mxu0 %v2773_v18  ;;  %2312 = vmatpush3.msra.mxu1 %v3002_v56 }
 0x329   :  { %1043 = vmatprep.subr.mxu0 %v2788_v21  ;;  %2313 = vmatprep.subr.mxu1 %v4126_v51 }
 0x32a   :  { %1044 = vmatpush1.msra.mxu0 %v2794_v22  ;;  %2314 = vmatpush3.msra.mxu1 %v3010_v57  ;;  %v4155_v22 = vld [vmem:[#allocation30_spill] sm:$0xff] }
 0x32b   :  { %1045 = vmatprep.subr.mxu0 %v2800_v23  ;;  %2315 = vmatprep.subr.mxu1 %v4126_v51 }
 0x32c   :  { %1046 = vmatpush1.msra.mxu0 %v2811_v25  ;;  %2316 = vmatpush3.msra.mxu1 %v3020_v58 }
 0x32d   :  { %1047 = vmatprep.subr.mxu0 %v2823_v27  ;;  %2317 = vmatprep.subr.mxu1 %v4126_v51  ;;  %v4156_v27 = vld [vmem:[#allocation20_spill] sm:$0xff] }
 0x32e   :  { %1048 = vmatpush1.msra.mxu0 %v2829_v28  ;;  %2318 = vmatpush3.msra.mxu1 %v3031_v59 }
 0x32f   :  { %1049 = vmatprep.subr.mxu0 %v2835_v29  ;;  %2319 = vmatprep.subr.mxu1 %v4126_v51 }
 0x330   :  { %1050 = vmatpush1.msra.mxu0 %v2846_v31  ;;  %2320 = vmatpush3.msra.mxu1 %v3040_v60 }
 0x331   :  { %1051 = vmatprep.subr.mxu0 %v2858_v33  ;;  %2321 = vmatprep.subr.mxu1 %v4126_v51 }
 0x332   :  { %1052 = vmatpush1.msra.mxu0 %v2864_v34  ;;  %2322 = vmatpush3.msra.mxu1 %v3050_v61  ;;  %v4157_v34 = vld [vmem:[#allocation21_spill] sm:$0xff] }
 0x333   :  { %1053 = vmatprep.subr.mxu0 %v2870_v35  ;;  %2323 = vmatprep.subr.mxu1 %v4126_v51 }
 0x334   :  { %1054 = vmatpush1.msra.mxu0 %v2881_v37  ;;  %2324 = vmatpush3.msra.mxu1 %v3059_v62 }
 0x335   :  { %1055 = vmatprep.subr.mxu0 %v2893_v39  ;;  %2325 = vmatprep.subr.mxu1 %v4126_v51 }
 0x336   :  { %1056 = vmatpush1.msra.mxu0 %v2899_v40  ;;  %2326 = vmatpush3.msra.mxu1 %v3069_v63 }
 0x337   :  { %1057 = vmatprep.subr.mxu0 %v2905_v41  ;;  %2327 = vmatprep.subr.mxu1 %v4126_v51 }
 0x338   :  { %1058 = vmatpush1.msra.mxu0 %v2913_v42  ;;  %2328 = vmatpush3.msra.mxu1 %v3078_v0 }
 0x339   :  { %1059 = vmatprep.subr.mxu0 %v2923_v44  ;;  %2329 = vmatprep.subr.mxu1 %v4126_v51 }
 0x33a   :  { %1060 = vmatpush1.msra.mxu0 %v2929_v45  ;;  %2330 = vmatpush3.msra.mxu1 %v3087_v1 }
 0x33b   :  { %1061 = vmatprep.subr.mxu0 %v2936_v46  ;;  %2331 = vmatprep.subr.mxu1 %v4126_v51  ;;  %v4158_v46 = vld [vmem:[#allocation32_spill] sm:$0xff] }
 0x33c   :  { %1062 = vmatpush1.msra.mxu0 %v2950_v48  ;;  %2332 = vmatpush3.msra.mxu1 %v4127_v43 }
 0x33d   :  { %1063 = vmatprep.subr.mxu0 %v4128_v54  ;;  %2333 = vmatprep.subr.mxu1 %v4126_v51 }
 0x33e   :  { %1064 = vmatpush1.msra.mxu0 %v4150_v11  ;;  %2334 = vmatpush3.msra.mxu1 %v4151_v12  ;;  %v3619_v11 = vld [vmem:[%s4053_s3 + $0x90] sm:$0xff] }
 0x33f   :  { %1065 = vmatprep.subr.mxu0 %v4152_v13  ;;  %2335 = vmatprep.subr.mxu1 %v4126_v51  ;;  %v3633_v13 = vld [vmem:[%s4053_s3 + $0x78] sm:$0xff] }
 0x340   :  { %1066 = vmatpush1.msra.mxu0 %v4153_v15  ;;  %1099 = vmatprep.mubr.f32.mxu0 %v4126_v51  ;;  %v3647_v15 = vld [vmem:[%s4053_s3 + $0x60] sm:$0xff] }
 0x341   :  { %2336 = vmatpush3.msra.mxu1 %v4154_v16  ;;  %2337 = vmatprep.mubr.msk.f32.mxu1 %vm2630_vm1, %v4126_v51 }
 0x342   :  { %1198 = vmatprep.subr.mxu0 %v3465_v17  ;;  %2340 = vmatprep.subr.mxu1 %v4126_v51 }
 0x3e1   :  { %v938_v18 = vpop.f32.mrf.mxu0  ;;  %v1009_v21 = vpop.f32.mrf.mxu1 }
 0x3e2   :  { %v939_v23 = vadd.f32 %v938_v18, %v4155_v22  ;;  %v1010_v42 = vadd.f32 %v1009_v21, %v3234_v6  ;;  %v3661_v18 = vld [vmem:[%s4053_s3 + $0x48] sm:$0xff]  ;;  %v3675_v21 = vld [vmem:[%s4053_s3 + $0x30] sm:$0xff] }
 0x3e3   :  { %v2304_v25 = vpop.f32.mrf.mxu1  ;;  %v940_v31 = vpop.f32.mrf.mxu0 }
 0x3e4   :  { %v1013_v28 = vadd.f32 %v939_v23, %v4156_v27  ;;  %v941_v33 = vadd.f32 %v940_v31, %v3221_v32  ;;  %v3689_v23 = vld [vmem:[%s4053_s3 + $0x18] sm:$0xff]  ;;  %v3703_v25 = vld [vmem:[%s4053_s3] sm:$0xff] }
 0x3e5   :  { %4160 = vst [vmem:[#allocation17_spill] sm:$0xff] %v3689_v23  ;;  %4162 = vst [vmem:[#allocation7_spill] sm:$0xff] %v3703_v25  ;;  %v4163_v31 = vld [vmem:[#allocation22_spill] sm:$0xff] }
 0x3e6   :  { %v1967_v29 = vmul.f32 -1.442695, %v1013_v28  ;;  %v1020_v35 = vadd.f32 %v941_v33, %v4157_v34 }
 0x3e8   :  { %2515 = vpow2.f32 %v1967_v29  ;;  %v1968_v37 = vmul.f32 -1.442695, %v1020_v35 }
 0x3ea   :  { %2517 = vpow2.f32 %v1968_v37 }
 0x3f5   :  { %v2516_v39 = vpop.eup %2515 }
 0x3f6   :  { %v1017_v40 = vadd.f32 1.0, %v2516_v39 }
 0x3f7   :  { %v2518_v41 = vpop.eup %2517 }
 0x3f8   :  { %2519 = vrcp.f32 %v1017_v40  ;;  %v1024_v48 = vadd.f32 1.0, %v2518_v41 }
 0x405   :  { %v2520_v44 = vpop.eup %2519 }
 0x406   :  { %v1027_v45 = vmul.f32 %v2520_v44, %v1010_v42 }
 0x408   :  { %v1028_v47 = vadd.f32 %v1027_v45, %v4158_v46 }
 0x40a   :  { %2521 = vtanh.f32 %v1028_v47 }
 0x40b   :  { %2523 = vrcp.f32 %v1024_v48  ;;  %v4165_v48 = vld [vmem:[#allocation35_spill] sm:$0xff] }
 0x417   :  { %v2522_v53 = vpop.eup %2521 }
 0x418   :  { %v1030_v54 = vsub.f32 %v3393_v5, %v2522_v53  ;;  %v2524_v38 = vpop.eup %2523 }
 0x41a   :  { %v1031_v3 = vmul.f32 %v2524_v38, %v1030_v54 }
 0x41c   :  { %v3476_v7 = vadd.f32 %v2522_v53, %v1031_v3 }
 0x41e   :  { %4159 = vst [vmem:[#allocation16_spill] sm:$0xff] %v3476_v7  ;;  %1100 = vmatmul.mubr.f32.vlgmr.msra.gmra.mxu0 %v3476_v7  ;;  %2338 = vmatmul.mubr.f32.vlgmr.msra.gmra.mxu1 %v3476_v7 }
 0x41f   :  { %1199 = vmatpush1.msra.mxu0 %v3483_v24  ;;  %2341 = vmatpush3.msra.mxu1 %v3489_v26 }
 0x420   :  { %1200 = vmatprep.subr.mxu0 %v3495_v4  ;;  %2342 = vmatprep.subr.mxu1 %v4126_v51 }
 0x421   :  { %1201 = vmatpush1.msra.mxu0 %v3502_v36  ;;  %2343 = vmatpush3.msra.mxu1 %v3508_v14 }
 0x422   :  { %1202 = vmatprep.subr.mxu0 %v3514_v10  ;;  %2344 = vmatprep.subr.mxu1 %v4126_v51 }
 0x423   :  { %1203 = vmatpush1.msra.mxu0 %v3521_v52  ;;  %2345 = vmatpush3.msra.mxu1 %v2993_v55  ;;  %v3542_v55 = vld [vmem:[%s4053_s3 + $0x110] sm:$0xff] }
 0x424   :  { %1204 = vmatprep.subr.mxu0 %v3528_v2  ;;  %2346 = vmatprep.subr.mxu1 %v4126_v51 }
 0x425   :  { %1205 = vmatpush1.msra.mxu0 %v3535_v9  ;;  %2347 = vmatpush3.msra.mxu1 %v3002_v56  ;;  %v3556_v56 = vld [vmem:[%s4053_s3 + $0xf8] sm:$0xff] }
 0x426   :  { %1206 = vmatprep.subr.mxu0 %v3542_v55  ;;  %2348 = vmatprep.subr.mxu1 %v4126_v51 }
 0x427   :  { %1207 = vmatpush1.msra.mxu0 %v3549_v50  ;;  %2349 = vmatpush3.msra.mxu1 %v3010_v57  ;;  %v3570_v57 = vld [vmem:[%s4053_s3 + $0xe0] sm:$0xff] }
 0x428   :  { %1208 = vmatprep.subr.mxu0 %v3556_v56  ;;  %2350 = vmatprep.subr.mxu1 %v4126_v51 }
 0x429   :  { %1209 = vmatpush1.msra.mxu0 %v3563_v20  ;;  %2351 = vmatpush3.msra.mxu1 %v3020_v58  ;;  %v3584_v58 = vld [vmem:[%s4053_s3 + $0xc8] sm:$0xff] }
 0x42a   :  { %1210 = vmatprep.subr.mxu0 %v3570_v57  ;;  %2352 = vmatprep.subr.mxu1 %v4126_v51 }
 0x42b   :  { %1211 = vmatpush1.msra.mxu0 %v3577_v8  ;;  %2353 = vmatpush3.msra.mxu1 %v3031_v59  ;;  %v3598_v59 = vld [vmem:[%s4053_s3 + $0xb0] sm:$0xff] }
 0x42c   :  { %1212 = vmatprep.subr.mxu0 %v3584_v58  ;;  %2354 = vmatprep.subr.mxu1 %v4126_v51 }
 0x42d   :  { %1213 = vmatpush1.msra.mxu0 %v3591_v30  ;;  %2355 = vmatpush3.msra.mxu1 %v3040_v60  ;;  %v3612_v60 = vld [vmem:[%s4053_s3 + $0x98] sm:$0xff] }
 0x42e   :  { %1214 = vmatprep.subr.mxu0 %v3598_v59  ;;  %2356 = vmatprep.subr.mxu1 %v4126_v51 }
 0x42f   :  { %1215 = vmatpush1.msra.mxu0 %v3605_v49  ;;  %2357 = vmatpush3.msra.mxu1 %v3050_v61  ;;  %v3626_v61 = vld [vmem:[%s4053_s3 + $0x80] sm:$0xff] }
 0x430   :  { %1216 = vmatprep.subr.mxu0 %v3612_v60  ;;  %2358 = vmatprep.subr.mxu1 %v4126_v51 }
 0x431   :  { %1217 = vmatpush1.msra.mxu0 %v3619_v11  ;;  %2359 = vmatpush3.msra.mxu1 %v3059_v62  ;;  %v3640_v62 = vld [vmem:[%s4053_s3 + $0x68] sm:$0xff] }
 0x432   :  { %1218 = vmatprep.subr.mxu0 %v3626_v61  ;;  %2360 = vmatprep.subr.mxu1 %v4126_v51 }
 0x433   :  { %1219 = vmatpush1.msra.mxu0 %v3633_v13  ;;  %2361 = vmatpush3.msra.mxu1 %v3069_v63  ;;  %v3654_v63 = vld [vmem:[%s4053_s3 + $0x50] sm:$0xff] }
 0x434   :  { %1220 = vmatprep.subr.mxu0 %v3640_v62  ;;  %2362 = vmatprep.subr.mxu1 %v4126_v51 }
 0x435   :  { %1221 = vmatpush1.msra.mxu0 %v3647_v15  ;;  %2363 = vmatpush3.msra.mxu1 %v3078_v0  ;;  %v3668_v0 = vld [vmem:[%s4053_s3 + $0x38] sm:$0xff] }
 0x436   :  { %1222 = vmatprep.subr.mxu0 %v3654_v63  ;;  %2364 = vmatprep.subr.mxu1 %v4126_v51 }
 0x437   :  { %1223 = vmatpush1.msra.mxu0 %v3661_v18  ;;  %2365 = vmatpush3.msra.mxu1 %v3087_v1  ;;  %v3682_v1 = vld [vmem:[%s4053_s3 + $0x20] sm:$0xff] }
 0x438   :  { %1224 = vmatprep.subr.mxu0 %v3668_v0  ;;  %2366 = vmatprep.subr.mxu1 %v4126_v51 }
 0x439   :  { %1225 = vmatpush1.msra.mxu0 %v3675_v21  ;;  %2367 = vmatpush3.msra.mxu1 %v4127_v43  ;;  %v3696_v43 = vld [vmem:[%s4053_s3 + $0x8] sm:$0xff] }
 0x43a   :  { %1226 = vmatprep.subr.mxu0 %v3682_v1  ;;  %2368 = vmatprep.subr.mxu1 %v4126_v51  ;;  %4161 = vst [vmem:[#allocation26_spill] sm:$0xff] %v3696_v43 }
 0x43b   :  { %1227 = vmatpush1.msra.mxu0 %v3689_v23  ;;  %2369 = vmatpush3.msra.mxu1 %v4151_v12 }
 0x43c   :  { %1228 = vmatprep.subr.mxu0 %v3696_v43  ;;  %2370 = vmatprep.subr.mxu1 %v4126_v51 }
 0x43d   :  { %1229 = vmatpush1.msra.mxu0 %v3703_v25  ;;  %1262 = vmatprep.mubr.f32.mxu0 %v4126_v51 }
 0x43e   :  { %2371 = vmatpush3.msra.mxu1 %v4154_v16  ;;  %2372 = vmatprep.mubr.msk.f32.mxu1 %vm2630_vm1, %v4126_v51  ;;  %v4164_v16 = vld [vmem:[#allocation23_spill] sm:$0xff] }
 0x43f   :  { %1361 = vmatprep.subr.mxu0 %v3465_v17  ;;  %2375 = vmatprep.subr.mxu1 %v4126_v51 }
 0x4de   :  { %v1101_v12 = vpop.f32.mrf.mxu0  ;;  %v1172_v27 = vpop.f32.mrf.mxu1 }
 0x4df   :  { %v1102_v28 = vadd.f32 %v1101_v12, %v4155_v22  ;;  %v1173_v45 = vadd.f32 %v1172_v27, %v3234_v6  ;;  %v3735_v27 = vld [vmem:[%s4053_s3 + $0x148] sm:$0xff] }
 0x4e0   :  { %v2339_v29 = vpop.f32.mrf.mxu1  ;;  %v1103_v35 = vpop.f32.mrf.mxu0 }
 0x4e1   :  { %v1176_v33 = vadd.f32 %v1102_v28, %v4163_v31  ;;  %v1104_v37 = vadd.f32 %v1103_v35, %v3221_v32  ;;  %v3744_v31 = vld [vmem:[%s4053_s3 + $0x130] sm:$0xff]  ;;  %v3771_v35 = vld [vmem:[%s4053_s3 + $0xe8] sm:$0xff] }
 0x4e3   :  { %v1969_v34 = vmul.f32 -1.442695, %v1176_v33  ;;  %v1183_v39 = vadd.f32 %v1104_v37, %v4164_v16  ;;  %v3753_v33 = vld [vmem:[%s4053_s3 + $0x118] sm:$0xff]  ;;  %v3780_v37 = vld [vmem:[%s4053_s3 + $0xd0] sm:$0xff] }
 0x4e4   :  { %v3789_v16 = vld [vmem:[%s4053_s3 + $0xb8] sm:$0xff] }
 0x4e5   :  { %2525 = vpow2.f32 %v1969_v34  ;;  %v1970_v40 = vmul.f32 -1.442695, %v1183_v39  ;;  %v3762_v34 = vld [vmem:[%s4053_s3 + $0x100] sm:$0xff] }
 0x4e6   :  { %v3798_v39 = vld [vmem:[%s4053_s3 + $0xa0] sm:$0xff] }
 0x4e7   :  { %2527 = vpow2.f32 %v1970_v40  ;;  %v3807_v40 = vld [vmem:[%s4053_s3 + $0x88] sm:$0xff] }
 0x4f2   :  { %v2526_v41 = vpop.eup %2525 }
 0x4f3   :  { %v1180_v42 = vadd.f32 1.0, %v2526_v41  ;;  %v3816_v41 = vld [vmem:[%s4053_s3 + $0x70] sm:$0xff] }
 0x4f4   :  { %v2528_v44 = vpop.eup %2527 }
 0x4f5   :  { %2529 = vrcp.f32 %v1180_v42  ;;  %v1187_v54 = vadd.f32 1.0, %v2528_v44  ;;  %v3825_v42 = vld [vmem:[%s4053_s3 + $0x58] sm:$0xff]  ;;  %v3834_v44 = vld [vmem:[%s4053_s3 + $0x40] sm:$0xff] }
 0x502   :  { %v2530_v46 = vpop.eup %2529 }
 0x503   :  { %v1190_v47 = vmul.f32 %v2530_v46, %v1173_v45  ;;  %v3843_v45 = vld [vmem:[%s4053_s3 + $0x28] sm:$0xff]  ;;  %v3853_v46 = vld [vmem:[%s4053_s3 + $0x10] sm:$0xff] }
 0x504   :  { %4166 = vst [vmem:[#allocation18_spill] sm:$0xff] %v3843_v45  ;;  %4167 = vst [vmem:[#allocation19_spill] sm:$0xff] %v3853_v46 }
 0x505   :  { %v1191_v53 = vadd.f32 %v1190_v47, %v4165_v48 }
 0x507   :  { %2531 = vtanh.f32 %v1191_v53 }
 0x508   :  { %2533 = vrcp.f32 %v1187_v54 }
 0x514   :  { %v2532_v38 = vpop.eup %2531 }
 0x515   :  { %v1193_v3 = vsub.f32 %v3476_v7, %v2532_v38  ;;  %v2534_v12 = vpop.eup %2533  ;;  %v4169_v7 = vld [vmem:[#allocation25_spill] sm:$0xff] }
 0x517   :  { %v1194_v28 = vmul.f32 %v2534_v12, %v1193_v3 }
 0x519   :  { %v3719_v29 = vadd.f32 %v2532_v38, %v1194_v28  ;;  %v4168_v38 = vld [vmem:[#allocation24_spill] sm:$0xff] }
 0x51b   :  { %1263 = vmatmul.mubr.f32.vlgmr.msra.gmra.mxu0 %v3719_v29  ;;  %2373 = vmatmul.mubr.f32.vlgmr.msra.gmra.mxu1 %v3719_v29 }
 0x51c   :  { %1362 = vmatpush1.msra.mxu0 %v3483_v24  ;;  %2376 = vmatpush3.msra.mxu1 %v3489_v26 }
 0x51d   :  { %1363 = vmatprep.subr.mxu0 %v3495_v4  ;;  %2377 = vmatprep.subr.mxu1 %v4126_v51 }
 0x51e   :  { %1364 = vmatpush1.msra.mxu0 %v3502_v36  ;;  %2378 = vmatpush3.msra.mxu1 %v3508_v14 }
 0x51f   :  { %1365 = vmatprep.subr.mxu0 %v3514_v10  ;;  %2379 = vmatprep.subr.mxu1 %v4126_v51 }
 0x520   :  { %1366 = vmatpush1.msra.mxu0 %v3521_v52  ;;  %2380 = vmatpush3.msra.mxu1 %v3735_v27 }
 0x521   :  { %1367 = vmatprep.subr.mxu0 %v3528_v2  ;;  %2381 = vmatprep.subr.mxu1 %v4126_v51 }
 0x522   :  { %1368 = vmatpush1.msra.mxu0 %v3535_v9  ;;  %2382 = vmatpush3.msra.mxu1 %v3744_v31 }
 0x523   :  { %1369 = vmatprep.subr.mxu0 %v3542_v55  ;;  %2383 = vmatprep.subr.mxu1 %v4126_v51 }
 0x524   :  { %1370 = vmatpush1.msra.mxu0 %v3549_v50  ;;  %2384 = vmatpush3.msra.mxu1 %v3753_v33 }
 0x525   :  { %1371 = vmatprep.subr.mxu0 %v3556_v56  ;;  %2385 = vmatprep.subr.mxu1 %v4126_v51 }
 0x526   :  { %1372 = vmatpush1.msra.mxu0 %v3563_v20  ;;  %2386 = vmatpush3.msra.mxu1 %v3762_v34 }
 0x527   :  { %1373 = vmatprep.subr.mxu0 %v3570_v57  ;;  %2387 = vmatprep.subr.mxu1 %v4126_v51 }
 0x528   :  { %1374 = vmatpush1.msra.mxu0 %v3577_v8  ;;  %2388 = vmatpush3.msra.mxu1 %v3771_v35 }
 0x529   :  { %1375 = vmatprep.subr.mxu0 %v3584_v58  ;;  %2389 = vmatprep.subr.mxu1 %v4126_v51 }
 0x52a   :  { %1376 = vmatpush1.msra.mxu0 %v3591_v30  ;;  %2390 = vmatpush3.msra.mxu1 %v3780_v37 }
 0x52b   :  { %1377 = vmatprep.subr.mxu0 %v3598_v59  ;;  %2391 = vmatprep.subr.mxu1 %v4126_v51 }
 0x52c   :  { %1378 = vmatpush1.msra.mxu0 %v3605_v49  ;;  %2392 = vmatpush3.msra.mxu1 %v3789_v16 }
 0x52d   :  { %1379 = vmatprep.subr.mxu0 %v3612_v60  ;;  %2393 = vmatprep.subr.mxu1 %v4126_v51 }
 0x52e   :  { %1380 = vmatpush1.msra.mxu0 %v3619_v11  ;;  %2394 = vmatpush3.msra.mxu1 %v3798_v39 }
 0x52f   :  { %1381 = vmatprep.subr.mxu0 %v3626_v61  ;;  %2395 = vmatprep.subr.mxu1 %v4126_v51 }
 0x530   :  { %1382 = vmatpush1.msra.mxu0 %v3633_v13  ;;  %2396 = vmatpush3.msra.mxu1 %v3807_v40 }
 0x531   :  { %1383 = vmatprep.subr.mxu0 %v3640_v62  ;;  %2397 = vmatprep.subr.mxu1 %v4126_v51 }
 0x532   :  { %1384 = vmatpush1.msra.mxu0 %v3647_v15  ;;  %2398 = vmatpush3.msra.mxu1 %v3816_v41 }
 0x533   :  { %1385 = vmatprep.subr.mxu0 %v3654_v63  ;;  %2399 = vmatprep.subr.mxu1 %v4126_v51 }
 0x534   :  { %1386 = vmatpush1.msra.mxu0 %v3661_v18  ;;  %2400 = vmatpush3.msra.mxu1 %v3825_v42 }
 0x535   :  { %1387 = vmatprep.subr.mxu0 %v3668_v0  ;;  %2401 = vmatprep.subr.mxu1 %v4126_v51 }
 0x536   :  { %1388 = vmatpush1.msra.mxu0 %v3675_v21  ;;  %2402 = vmatpush3.msra.mxu1 %v3834_v44 }
 0x537   :  { %1389 = vmatprep.subr.mxu0 %v3682_v1  ;;  %2403 = vmatprep.subr.mxu1 %v4126_v51 }
 0x538   :  { %1390 = vmatpush1.msra.mxu0 %v3689_v23  ;;  %2404 = vmatpush3.msra.mxu1 %v3843_v45 }
 0x539   :  { %1391 = vmatprep.subr.mxu0 %v3696_v43  ;;  %2405 = vmatprep.subr.mxu1 %v4126_v51 }
 0x53a   :  { %1392 = vmatpush1.msra.mxu0 %v3703_v25  ;;  %1425 = vmatprep.mubr.f32.mxu0 %v4126_v51 }
 0x53b   :  { %2406 = vmatpush3.msra.mxu1 %v3853_v46  ;;  %2407 = vmatprep.mubr.msk.f32.mxu1 %vm2630_vm1, %v4126_v51 }
 0x53c   :  { %1524 = vmatprep.subr.mxu0 %v3465_v17  ;;  %2410 = vmatprep.subr.mxu1 %v4126_v51 }
 0x5db   :  { %v1264_v47 = vpop.f32.mrf.mxu0  ;;  %v1335_v48 = vpop.f32.mrf.mxu1 }
 0x5dc   :  { %v1265_v53 = vadd.f32 %v1264_v47, %v4155_v22  ;;  %v1336_v45 = vadd.f32 %v1335_v48, %v3234_v6 }
 0x5dd   :  { %v2374_v54 = vpop.f32.mrf.mxu1  ;;  %v1266_v28 = vpop.f32.mrf.mxu0 }
 0x5de   :  { %v1339_v3 = vadd.f32 %v1265_v53, %v4168_v38  ;;  %v1267_v19 = vadd.f32 %v1266_v28, %v3221_v32  ;;  %v4170_v54 = vld [vmem:[#allocation34_spill] sm:$0xff] }
 0x5e0   :  { %v1971_v12 = vmul.f32 -1.442695, %v1339_v3  ;;  %v1346_v5 = vadd.f32 %v1267_v19, %v4169_v7  ;;  %v4172_v7 = vld [vmem:[#allocation18_spill] sm:$0xff] }
 0x5e2   :  { %2535 = vpow2.f32 %v1971_v12  ;;  %v1972_v46 = vmul.f32 -1.442695, %v1346_v5 }
 0x5e4   :  { %2537 = vpow2.f32 %v1972_v46 }
 0x5ef   :  { %v2536_v25 = vpop.eup %2535 }
 0x5f0   :  { %v1343_v43 = vadd.f32 1.0, %v2536_v25  ;;  %v1700_v25 = vld [vmem:[%s4056_s6 + $0x68] sm:$0xff] }
 0x5f1   :  { %v2538_v17 = vpop.eup %2537 }
 0x5f2   :  { %2539 = vrcp.f32 %v1343_v43  ;;  %v1350_v53 = vadd.f32 1.0, %v2538_v17  ;;  %v1701_v43 = vld [vmem:[%s4056_s6 + $0x70] sm:$0xff] }
 0x5ff   :  { %v2540_v23 = vpop.eup %2539 }
 0x600   :  { %v1353_v47 = vmul.f32 %v2540_v23, %v1336_v45  ;;  %v1702_v23 = vld [vmem:[%s4056_s6 + $0x78] sm:$0xff]  ;;  %v1687_v45 = vld [vmem:[%s4056_s6] sm:$0xff] }
 0x602   :  { %v1354_v22 = vadd.f32 %v1353_v47, %v4170_v54  ;;  %v4180_v47 = vld [vmem:[#allocation29_spill] sm:$0xff] }
 0x604   :  { %2541 = vtanh.f32 %v1354_v22  ;;  %v4171_v22 = vld [vmem:[#allocation17_spill] sm:$0xff] }
 0x605   :  { %2543 = vrcp.f32 %v1350_v53 }
 0x611   :  { %v2542_v38 = vpop.eup %2541 }
 0x612   :  { %v1356_v3 = vsub.f32 %v3719_v29, %v2542_v38  ;;  %v2544_v12 = vpop.eup %2543 }
 0x614   :  { %v1357_v19 = vmul.f32 %v2544_v12, %v1356_v3  ;;  %v4181_v12 = vld [vmem:[#allocation31_spill] sm:$0xff] }
 0x616   :  { %v3867_v5 = vadd.f32 %v2542_v38, %v1357_v19 }
 0x618   :  { %1426 = vmatmul.mubr.f32.vlgmr.msra.gmra.mxu0 %v3867_v5  ;;  %2408 = vmatmul.mubr.f32.vlgmr.msra.gmra.mxu1 %v3867_v5 }
 0x619   :  { %1525 = vmatpush1.msra.mxu0 %v3483_v24  ;;  %2411 = vmatpush3.msra.mxu1 %v3489_v26  ;;  %v4173_v24 = vld [vmem:[#allocation26_spill] sm:$0xff]  ;;  %v4174_v26 = vld [vmem:[#allocation7_spill] sm:$0xff] }
 0x61a   :  { %1526 = vmatprep.subr.mxu0 %v3495_v4  ;;  %2412 = vmatprep.subr.mxu1 %v4126_v51  ;;  %v4175_v4 = vld [vmem:[#allocation19_spill] sm:$0xff] }
 0x61b   :  { %1527 = vmatpush1.msra.mxu0 %v3502_v36  ;;  %2413 = vmatpush3.msra.mxu1 %v3508_v14 }
 0x61c   :  { %1528 = vmatprep.subr.mxu0 %v3514_v10  ;;  %2414 = vmatprep.subr.mxu1 %v4126_v51  ;;  %v4176_v10 = vld [vmem:[#allocation30_spill] sm:$0xff] }
 0x61d   :  { %1529 = vmatpush1.msra.mxu0 %v3521_v52  ;;  %2415 = vmatpush3.msra.mxu1 %v3735_v27  ;;  %v1699_v27 = vld [vmem:[%s4056_s6 + $0x60] sm:$0xff] }
 0x61e   :  { %1530 = vmatprep.subr.mxu0 %v3528_v2  ;;  %2416 = vmatprep.subr.mxu1 %v4126_v51 }
 0x61f   :  { %1531 = vmatpush1.msra.mxu0 %v3535_v9  ;;  %2417 = vmatpush3.msra.mxu1 %v3744_v31  ;;  %v4177_v9 = vld [vmem:[#allocation27_spill] sm:$0xff]  ;;  %v1698_v31 = vld [vmem:[%s4056_s6 + $0x58] sm:$0xff] }
 0x620   :  { %1532 = vmatprep.subr.mxu0 %v3542_v55  ;;  %2418 = vmatprep.subr.mxu1 %v4126_v51 }
 0x621   :  { %1533 = vmatpush1.msra.mxu0 %v3549_v50  ;;  %2419 = vmatpush3.msra.mxu1 %v3753_v33  ;;  %v1697_v33 = vld [vmem:[%s4056_s6 + $0x50] sm:$0xff] }
 0x622   :  { %1534 = vmatprep.subr.mxu0 %v3556_v56  ;;  %2420 = vmatprep.subr.mxu1 %v4126_v51 }
 0x623   :  { %1535 = vmatpush1.msra.mxu0 %v3563_v20  ;;  %2421 = vmatpush3.msra.mxu1 %v3762_v34  ;;  %v1696_v34 = vld [vmem:[%s4056_s6 + $0x48] sm:$0xff] }
 0x624   :  { %1536 = vmatprep.subr.mxu0 %v3570_v57  ;;  %2422 = vmatprep.subr.mxu1 %v4126_v51  ;;  %v4178_v57 = vld [vmem:[#allocation28_spill] sm:$0xff] }
 0x625   :  { %1537 = vmatpush1.msra.mxu0 %v3577_v8  ;;  %2423 = vmatpush3.msra.mxu1 %v3771_v35  ;;  %v1695_v35 = vld [vmem:[%s4056_s6 + $0x40] sm:$0xff] }
 0x626   :  { %1538 = vmatprep.subr.mxu0 %v3584_v58  ;;  %2424 = vmatprep.subr.mxu1 %v4126_v51 }
 0x627   :  { %1539 = vmatpush1.msra.mxu0 %v3591_v30  ;;  %2425 = vmatpush3.msra.mxu1 %v3780_v37  ;;  %v1694_v37 = vld [vmem:[%s4056_s6 + $0x38] sm:$0xff] }
 0x628   :  { %1540 = vmatprep.subr.mxu0 %v3598_v59  ;;  %2426 = vmatprep.subr.mxu1 %v4126_v51 }
 0x629   :  { %1541 = vmatpush1.msra.mxu0 %v3605_v49  ;;  %2427 = vmatpush3.msra.mxu1 %v3789_v16  ;;  %v1693_v16 = vld [vmem:[%s4056_s6 + $0x30] sm:$0xff] }
 0x62a   :  { %1542 = vmatprep.subr.mxu0 %v3612_v60  ;;  %2428 = vmatprep.subr.mxu1 %v4126_v51 }
 0x62b   :  { %1543 = vmatpush1.msra.mxu0 %v3619_v11  ;;  %2429 = vmatpush3.msra.mxu1 %v3798_v39  ;;  %v1692_v39 = vld [vmem:[%s4056_s6 + $0x28] sm:$0xff] }
 0x62c   :  { %1544 = vmatprep.subr.mxu0 %v3626_v61  ;;  %2430 = vmatprep.subr.mxu1 %v4126_v51 }
 0x62d   :  { %1545 = vmatpush1.msra.mxu0 %v3633_v13  ;;  %2431 = vmatpush3.msra.mxu1 %v3807_v40  ;;  %v4179_v13 = vld [vmem:[#allocation37_spill] sm:$0xff]  ;;  %v1691_v40 = vld [vmem:[%s4056_s6 + $0x20] sm:$0xff] }
 0x62e   :  { %1546 = vmatprep.subr.mxu0 %v3640_v62  ;;  %2432 = vmatprep.subr.mxu1 %v4126_v51 }
 0x62f   :  { %1547 = vmatpush1.msra.mxu0 %v3647_v15  ;;  %2433 = vmatpush3.msra.mxu1 %v3816_v41  ;;  %v1690_v41 = vld [vmem:[%s4056_s6 + $0x18] sm:$0xff] }
 0x630   :  { %1548 = vmatprep.subr.mxu0 %v3654_v63  ;;  %2434 = vmatprep.subr.mxu1 %v4126_v51 }
 0x631   :  { %1549 = vmatpush1.msra.mxu0 %v3661_v18  ;;  %2435 = vmatpush3.msra.mxu1 %v3825_v42  ;;  %v1689_v42 = vld [vmem:[%s4056_s6 + $0x10] sm:$0xff] }
 0x632   :  { %1550 = vmatprep.subr.mxu0 %v3668_v0  ;;  %2436 = vmatprep.subr.mxu1 %v4126_v51 }
 0x633   :  { %1551 = vmatpush1.msra.mxu0 %v3675_v21  ;;  %2437 = vmatpush3.msra.mxu1 %v3834_v44  ;;  %v1688_v44 = vld [vmem:[%s4056_s6 + $0x8] sm:$0xff] }
 0x634   :  { %1552 = vmatprep.subr.mxu0 %v3682_v1  ;;  %2438 = vmatprep.subr.mxu1 %v4126_v51 }
 0x635   :  { %1553 = vmatpush1.msra.mxu0 %v4171_v22  ;;  %2439 = vmatpush3.msra.mxu1 %v4172_v7 }
 0x636   :  { %1554 = vmatprep.subr.mxu0 %v4173_v24  ;;  %2440 = vmatprep.subr.mxu1 %v4126_v51 }
 0x637   :  { %1555 = vmatpush1.msra.mxu0 %v4174_v26  ;;  %1588 = vmatprep.mubr.f32.mxu0 %v4126_v51 }
 0x638   :  { %2441 = vmatpush3.msra.mxu1 %v4175_v4  ;;  %2442 = vmatprep.mubr.msk.f32.mxu1 %vm2630_vm1, %v4126_v51 }
 0x639   :  { %2445 = vmatprep.subr.mxu0 %v4126_v51 }
 0x6d8   :  { %v1427_v36 = vpop.f32.mrf.mxu0  ;;  %v1498_v14 = vpop.f32.mrf.mxu1 }
 0x6d9   :  { %v1428_v52 = vadd.f32 %v1427_v36, %v4176_v10  ;;  %v1499_v60 = vadd.f32 %v1498_v14, %v3234_v6 }
 0x6da   :  { %v2409_v2 = vpop.f32.mrf.mxu1  ;;  %v1429_v56 = vpop.f32.mrf.mxu0 }
 0x6db   :  { %v1502_v55 = vadd.f32 %v1428_v52, %v4177_v9  ;;  %v1430_v20 = vadd.f32 %v1429_v56, %v3221_v32 }
 0x6dd   :  { %v1973_v50 = vmul.f32 -1.442695, %v1502_v55  ;;  %v1509_v8 = vadd.f32 %v1430_v20, %v4178_v57  ;;  %v1977_v20 = vld [vmem:[%s4057_s7] ss:$0 sm:$0xff] }
 0x6df   :  { %2545 = vpow2.f32 %v1973_v50  ;;  %v1974_v58 = vmul.f32 -1.442695, %v1509_v8 }
 0x6e1   :  { %2547 = vpow2.f32 %v1974_v58  ;;  %v1978_v58 = vld [vmem:[%s4058_s8] ss:$0 sm:$0xff] }
 0x6ec   :  { %v2546_v30 = vpop.eup %2545 }
 0x6ed   :  { %v1506_v59 = vadd.f32 1.0, %v2546_v30 }
 0x6ee   :  { %v2548_v49 = vpop.eup %2547 }
 0x6ef   :  { %2549 = vrcp.f32 %v1506_v59  ;;  %v1513_v15 = vadd.f32 1.0, %v2548_v49  ;;  %v4183_v49 = vld [vmem:[#allocation8_spill] sm:$0xff] }
 0x6fc   :  { %v2550_v11 = vpop.eup %2549 }
 0x6fd   :  { %v1516_v61 = vmul.f32 %v2550_v11, %v1499_v60  ;;  %v4184_v11 = vld [vmem:[#allocation38_spill] sm:$0xff] }
 0x6ff   :  { %v1517_v62 = vadd.f32 %v1516_v61, %v4179_v13  ;;  %v4185_v13 = vld [vmem:[#allocation16_spill] sm:$0xff] }
 0x701   :  { %2551 = vtanh.f32 %v1517_v62 }
 0x702   :  { %2553 = vrcp.f32 %v1513_v15  ;;  %v4186_v15 = vld [vmem:[#allocation12_spill] sm:$0xff] }
 0x70e   :  { %v2552_v63 = vpop.eup %2551 }
 0x70f   :  { %v1519_v18 = vsub.f32 %v3867_v5, %v2552_v63  ;;  %v2554_v0 = vpop.eup %2553 }
 0x711   :  { %v1520_v21 = vmul.f32 %v2554_v0, %v1519_v18 }
 0x713   :  { %v3944_v1 = vadd.f32 %v2552_v63, %v1520_v21 }
 0x715   :  { %1589 = vmatmul.mubr.f32.vlgmr.msra.gmra.mxu0 %v3944_v1  ;;  %2443 = vmatmul.mubr.f32.vlgmr.msra.gmra.mxu1 %v3944_v1 }
 0x716   :  { %2477 = vmatprep.mubr.msk.f32.mxu0 %vm2630_vm1, %v4126_v51  ;;  %2446 = vmatpush3.msra.mxu0 %v1702_v23 }
 0x717   :  { %2447 = vmatprep.subr.mxu0 %v4126_v51 }
 0x718   :  { %2448 = vmatpush3.msra.mxu0 %v1701_v43  ;;  %v4187_v43 = vlaneseq }
 0x719   :  { %2449 = vmatprep.subr.mxu0 %v4126_v51 }
 0x71a   :  { %2450 = vmatpush3.msra.mxu0 %v1700_v25  ;;  %v1833_v25 = vand.u32 127, %v4187_v43 }
 0x71b   :  { %2451 = vmatprep.subr.mxu0 %v4126_v51 }
 0x71c   :  { %2452 = vmatpush3.msra.mxu0 %v1699_v27  ;;  %v1794_v27 = vstv %s4059_s9  ;;  %vm1912_vm10 = vcmp.lt.s32.totalorder %v1833_v25, 2 }
 0x71d   :  { %2453 = vmatprep.subr.mxu0 %v4126_v51 }
 0x71e   :  { %2454 = vmatpush3.msra.mxu0 %v1698_v31 }
 0x71f   :  { %2455 = vmatprep.subr.mxu0 %v4126_v51 }
 0x720   :  { %2456 = vmatpush3.msra.mxu0 %v1697_v33 }
 0x721   :  { %2457 = vmatprep.subr.mxu0 %v4126_v51 }
 0x722   :  { %2458 = vmatpush3.msra.mxu0 %v1696_v34  ;;  %v4188_v34 = vld [vmem:[#allocation15_spill] sm:$0xff] }
 0x723   :  { %2459 = vmatprep.subr.mxu0 %v4126_v51 }
 0x724   :  { %2460 = vmatpush3.msra.mxu0 %v1695_v35  ;;  %v1836_v35 = vsub.s32 %v1833_v25, %v4188_v34 }
 0x725   :  { %2461 = vmatprep.subr.mxu0 %v4126_v51 }
 0x726   :  { %2462 = vmatpush3.msra.mxu0 %v1694_v37 }
 0x727   :  { %2463 = vmatprep.subr.mxu0 %v4126_v51 }
 0x728   :  { %2464 = vmatpush3.msra.mxu0 %v1693_v16 }
 0x729   :  { %2465 = vmatprep.subr.mxu0 %v4126_v51 }
 0x72a   :  { %2466 = vmatpush3.msra.mxu0 %v1692_v39 }
 0x72b   :  { %2467 = vmatprep.subr.mxu0 %v4126_v51 }
 0x72c   :  { %2468 = vmatpush3.msra.mxu0 %v1691_v40 }
 0x72d   :  { %2469 = vmatprep.subr.mxu0 %v4126_v51 }
 0x72e   :  { %2470 = vmatpush3.msra.mxu0 %v1690_v41 }
 0x72f   :  { %2471 = vmatprep.subr.mxu0 %v4126_v51 }
 0x730   :  { %2472 = vmatpush3.msra.mxu0 %v1689_v42 }
 0x731   :  { %2473 = vmatprep.subr.mxu0 %v4126_v51 }
 0x732   :  { %2474 = vmatpush3.msra.mxu0 %v1688_v44 }
 0x733   :  { %2475 = vmatprep.subr.mxu0 %v4126_v51 }
 0x734   :  { %2476 = vmatpush3.msra.mxu0 %v1687_v45 }
 0x7d5   :  { %v1590_v46 = vpop.f32.mrf.mxu0  ;;  %v1661_v48 = vpop.f32.mrf.mxu1 }
 0x7d6   :  { %v1591_v28 = vadd.f32 %v1590_v46, %v4176_v10  ;;  %v1662_v4 = vadd.f32 %v1661_v48, %v3234_v6  ;;  %v4182_v10 = vld [vmem:[#allocation36_spill] sm:$0xff] }
 0x7d7   :  { %v2444_v17 = vpop.f32.mrf.mxu1  ;;  %v1592_v38 = vpop.f32.mrf.mxu0 }
 0x7d8   :  { %v1665_v54 = vadd.f32 %v1591_v28, %v4180_v47  ;;  %v1593_v3 = vadd.f32 %v1592_v38, %v3221_v32 }
 0x7da   :  { %v1975_v53 = vmul.f32 -1.442695, %v1665_v54  ;;  %v1672_v19 = vadd.f32 %v1593_v3, %v4181_v12 }
 0x7dc   :  { %2555 = vpow2.f32 %v1975_v53  ;;  %v1976_v22 = vmul.f32 -1.442695, %v1672_v19 }
 0x7de   :  { %2557 = vpow2.f32 %v1976_v22 }
 0x7e9   :  { %v2556_v7 = vpop.eup %2555 }
 0x7ea   :  { %v1669_v24 = vadd.f32 1.0, %v2556_v7 }
 0x7eb   :  { %v2558_v26 = vpop.eup %2557 }
 0x7ec   :  { %2559 = vrcp.f32 %v1669_v24  ;;  %v1676_v2 = vadd.f32 1.0, %v2558_v26 }
 0x7f9   :  { %v2560_v36 = vpop.eup %2559 }
 0x7fa   :  { %v1679_v14 = vmul.f32 %v2560_v36, %v1662_v4 }
 0x7fc   :  { %v1680_v52 = vadd.f32 %v1679_v14, %v4182_v10 }
 0x7fe   :  { %2561 = vtanh.f32 %v1680_v52 }
 0x7ff   :  { %2563 = vrcp.f32 %v1676_v2 }
 0x80b   :  { %v2562_v9 = vpop.eup %2561 }
 0x80c   :  { %v1682_v32 = vsub.f32 %v3944_v1, %v2562_v9  ;;  %v2564_v55 = vpop.eup %2563 }
 0x80e   :  { %v1683_v50 = vmul.f32 %v2564_v55, %v1682_v32  ;;  %v1897_v55 = vld [vmem:[%s4051_s1] sm:$0xff] }
 0x810   :  { %v1684_v56 = vadd.f32 %v2562_v9, %v1683_v50 }
 0x812   :  { %2478 = vmatmul.mubr.f32.vlgmr.msra.gmra.mxu0 %v1684_v56 }
 0x8d2   :  { %v1776_v57 = vpop.f32.mrf.mxu0 }
 0x8d3   :  { %v1777_v6 = vadd.f32 %v1977_v20, %v1776_v57 }
 0x8d4   :  { %v2479_v8 = vpop.f32.mrf.mxu0 }
 0x8d5   :  { %2565 = vtanh.f32 %v1777_v6  ;;  %v1979_v8 = vsel %vm1912_vm10, 1.0, %v4126_v51 }
 0x8e2   :  { %v2566_v30 = vpop.eup %2565 }
 0x8e3   :  { %v1788_v59 = vmul.f32 %v2566_v30, %v1978_v58 }
 0x8e5   :  { %v1802_v60 = vmul.f32 %v1788_v59, %v4183_v49  ;;  %v1791_v61 = vmul.f32 %v1788_v59, %v4184_v11  ;;  %v1807_v62 = vmul.f32 %v1788_v59, %v4185_v13  ;;  %v1797_v63 = vmul.f32 %v1788_v59, %v4186_v15 }
 0x8e6   :  { %v1817_v18 = vmul.f32 %v1788_v59, %v3867_v5  ;;  %v1812_v0 = vmul.f32 %v1788_v59, %v3719_v29  ;;  %v1827_v21 = vmul.f32 %v1788_v59, %v1684_v56  ;;  %v1822_v23 = vmul.f32 %v1788_v59, %v3944_v1 }
 0x8e7   :  { %1803 = vadd.xlane.f32.xlu1 %v1802_v60  ;;  %1792 = vadd.xlane.f32.xlu0 %v1791_v61 }
 0x8eb   :  { %1808 = vadd.xlane.f32.xlu1 %v1807_v62  ;;  %1798 = vadd.xlane.f32.xlu0 %v1797_v63 }
 0x8ef   :  { %1818 = vadd.xlane.f32.xlu1 %v1817_v18  ;;  %1813 = vadd.xlane.f32.xlu0 %v1812_v0 }
 0x8f3   :  { %1828 = vadd.xlane.f32.xlu1 %v1827_v21  ;;  %1823 = vadd.xlane.f32.xlu0 %v1822_v23 }
 0x970   :  { %v1804_v31 = vpop.xlane.xlu1 %1803  ;;  %v1793_v33 = vpop.xlane.xlu0 %1792 }
 0x971   :  { %v1795_v5 = vadd.f32 %v1794_v27, %v1793_v33  ;;  %v1805_v37 = vadd.f32 %v1804_v31, %v1794_v27 }
 0x973   :  { %v1837_v1 = vrot.slane %v1795_v5, %v1836_v35  ;;  %v1849_v42 = vrot.slane %v1805_v37, %v1836_v35 }
 0x974   :  { %v1809_v29 = vpop.xlane.xlu1 %1808  ;;  %v1799_v16 = vpop.xlane.xlu0 %1798 }
 0x975   :  { %v1810_v39 = vadd.f32 %v1809_v29, %v1794_v27  ;;  %v1800_v40 = vadd.f32 %v1799_v16, %v1794_v27 }
 0x977   :  { %v1843_v41 = vrot.slane %v1800_v40, %v1836_v35  ;;  %v1855_v46 = vrot.slane %v1810_v39, %v1836_v35 }
 0x978   :  { %v1819_v44 = vpop.xlane.xlu1 %1818  ;;  %v1814_v45 = vpop.xlane.xlu0 %1813 }
 0x979   :  { %v1882_v48 = vsel %vm1881_vm2, %v1837_v1, %v1843_v41  ;;  %v1820_v28 = vadd.f32 %v1819_v44, %v1794_v27  ;;  %v1815_v17 = vadd.f32 %v1814_v45, %v1794_v27 }
 0x97a   :  { %v1884_v47 = vsel %vm1883_vm3, %v1882_v48, %v1849_v42 }
 0x97b   :  { %v1886_v54 = vsel %vm1885_vm4, %v1884_v47, %v1855_v46  ;;  %v1861_v53 = vrot.slane %v1815_v17, %v1836_v35  ;;  %v1867_v38 = vrot.slane %v1820_v28, %v1836_v35 }
 0x97c   :  { %v1829_v3 = vpop.xlane.xlu1 %1828  ;;  %v1824_v12 = vpop.xlane.xlu0 %1823 }
 0x97d   :  { %v1888_v19 = vsel %vm1887_vm5, %v1886_v54, %v1861_v53  ;;  %v1830_v22 = vadd.f32 %v1829_v3, %v1794_v27  ;;  %v1825_v7 = vadd.f32 %v1824_v12, %v1794_v27 }
 0x97e   :  { %v1890_v4 = vsel %vm1889_vm6, %v1888_v19, %v1867_v38 }
 0x97f   :  { %v1879_v24 = vrot.slane %v1830_v22, %v1836_v35  ;;  %v1873_v26 = vrot.slane %v1825_v7, %v1836_v35 }
 0x981   :  { %v1892_v36 = vsel %vm1891_vm7, %v1890_v4, %v1873_v26 }
 0x982   :  { %v1894_v14 = vsel %vm1893_vm8, %v1892_v36, %v1879_v24 }
 0x983   :  { %v1901_v10 = vand.u32 2147483647, %v1894_v14  ;;  %1896 = vst.msk [vmem:[%s4060_s10] sm:$0xff] %vm1895_vm9, %v1894_v14  ;;  %v1898_v50 = vmax.f32 %v1894_v14, 0.0  ;;  %v1899_v56 = vmul.f32 %v1897_v55, %v1894_v14  ;;  %s2631_s10 = smov [#allocation4]  }
 0x985   :  { %v1902_v52 = vsub.f32 0.0, %v1901_v10  ;;  %v1900_v57 = vsub.f32 %v1898_v50, %v1899_v56 }
 0x987   :  { %v1903_v2 = vmul.f32 1.442695, %v1902_v52 }
 0x989   :  { %2567 = vpow2.f32 %v1903_v2 }
 0x996   :  { %v2568_v9 = vpop.eup %2567 }
 0x997   :  { %v1905_v32 = vadd.f32 1.0, %v2568_v9 }
 0x999   :  { %2569 = vlog2.f32 %v1905_v32 }
 0x9a6   :  { %v2570_v20 = vpop.eup %2569 }
 0x9a7   :  { %v1907_v6 = vmul.f32 0.6931472, %v2570_v20 }
 0x9a9   :  { %v1908_v58 = vadd.f32 %v1907_v6, %v1900_v57 }
 0x9ab   :  { %v1915_v30 = vmul.f32 %v1979_v8, %v1908_v58 }
 0x9ad   :  { %v1916_v59 = vsel %vm1895_vm9, %v1915_v30, 0.0 }
 0x9ae   :  { %1917 = vadd.xlane.f32.xlu0 %v1916_v59 }
 0xa37   :  { %v1918_v49 = vpop.xlane.xlu0 %1917 }
 0xa38   :  { %v1919_v60 = vrot.slane %v1918_v49, 4 }
 0xa3a   :  { %v1920_v11 = vadd.f32 %v1919_v60, %v1918_v49 }
 0xa3c   :  { %v1921_v61 = vrot.slane %v1920_v11, 2 }
 0xa3e   :  { %v1922_v13 = vadd.f32 %v1921_v61, %v1920_v11 }
 0xa40   :  { %v1923_v62 = vrot.slane %v1922_v13, 1 }
 0xa42   :  { %v1924_v15 = vadd.f32 %v1923_v62, %v1922_v13 }
 0xa44   :  { %2480 = vpush %v1924_v15 }
 0xa75   :  { %s2481_s1 = spop %2480 }
 0xa76   :  { %1927 = sst [smem:[#allocation4]] %s2481_s1 }
 0xa77   :  { %1937 = dma.smem_to_hbm %s2631_s10, 16, %s4061_s11, [#allocation5]  }
 0xa78   :  { %2627 = dma.done.wait [#allocation5], 16  }
 0xa79   :  { %2628 = vsyncadd [#allocation5], 4294967280 }
 0xa7a   :  { %1943 = sfence }
 0xa7b   :  { %1944 = vsyncpa [#allocation5], 1 }

</bundles_post_ra>
